<compile_context>
chip_gen: v5e
topology: v5e:2x2
jax: 0.10.0
libtpu: 0.0.40
codegen_flags: <defaults>
</compile_context>

<pallas_src>
import math

import numpy as np
import jax
import jax.numpy as jnp
from jax import lax
from jax.experimental import pallas as pl
from jax.experimental.pallas import tpu as pltpu

_VMEM_LIMIT = 48 * 1024 * 1024
_LEAK = 0.2


# ----------------------------------------------------------------------------
# Wrapper-side helpers (tiny tensors / pure data movement)
# ----------------------------------------------------------------------------
def _pick_hw_tile(hw, cap=8192):
    """Largest divisor of hw that is a multiple of 128 and <= cap (else hw)."""
    best = None
    t = 128
    while t <= min(hw, cap):
        if hw % t == 0:
            best = t
        t += 128
    return best if best is not None else hw


def modulated_weights(w, style, demod, eps=1e-8):
    # w: (O, C, kh, kw), style: (B, C) -> (B, O, C, kh, kw)
    wmod = w[None] * (style[:, None, :, None, None] + 1.0)
    if demod:
        d = lax.rsqrt(jnp.sum(wmod * wmod, axis=(2, 3, 4), keepdims=True) + eps)
        wmod = wmod * d
    return wmod


def _up1d(x, axis):
    # bilinear x2, align_corners=False, along one axis (pure data movement)
    n = x.shape[axis]
    x_prev = jnp.concatenate([lax.slice_in_dim(x, 0, 1, axis=axis),
                              lax.slice_in_dim(x, 0, n - 1, axis=axis)], axis=axis)
    x_next = jnp.concatenate([lax.slice_in_dim(x, 1, n, axis=axis),
                              lax.slice_in_dim(x, n - 1, n, axis=axis)], axis=axis)
    even = 0.25 * x_prev + 0.75 * x
    odd = 0.75 * x + 0.25 * x_next
    out = jnp.stack([even, odd], axis=axis + 1)
    new_shape = list(x.shape)
    new_shape[axis] = 2 * n
    return out.reshape(new_shape)


# TODO(synk): the GeneratorBlock *input* upsample (bilinear, no blur) is pure
# data movement; it stays as XLA glue (could be folded into conv1's input DMA).
def upsample2x_bilinear(x):
    return _up1d(_up1d(x, 2), 3)


def _to_ext_flat(x, m):
    # (B, C, H, W) -> zero pad 1px -> flatten spatial -> extend flat axis by m
    B, C, H, W = x.shape
    xp = jnp.pad(x, ((0, 0), (0, 0), (1, 1), (1, 1)))
    xf = xp.reshape(B, C, (H + 2) * (W + 2))
    return jnp.pad(xf, ((0, 0), (0, 0), (m, m)))


# ----------------------------------------------------------------------------
# Kernel 1/2: modulated 3x3 conv (demod) + noise add + leaky ReLU, fused.
# Works on a zero-padded, flattened spatial layout so every tap is a
# contiguous-slice (O,C)x(C,Npad) MXU matmul.  Output is emitted in the same
# extended padded-flat layout so conv2 consumes conv1's output directly.
# ----------------------------------------------------------------------------
def _make_conv3x3_kernel(wp):
    def kernel(x_ref, w_ref, nplane_ref, nw_ref, nb_ref, mask_ref, o_ref):
        # x_ref     : (1, C, Next)   zero-padded, flattened, extended input
        # w_ref     : (1, 9, O, C)   per-batch modulated+demodulated weights
        # nplane_ref: (1, 1, Npad)   (transposed) noise plane, padded-flat layout
        # nw_ref    : (O, 1)         to_noise weight,  nb_ref: (O, 1) bias
        # mask_ref  : (1, Npad)      1 at interior pixels, 0 at padding pixels
        # o_ref     : (1, O, Next)   leaky_relu(conv + noise), same layout
        npad = mask_ref.shape[1]
        next_ = x_ref.shape[2]
        m = (next_ - npad) // 2
        o_ch = w_ref.shape[2]
        acc = jnp.zeros((o_ch, npad), jnp.float32)
        for t in range(9):
            ki, kj = t // 3, t % 3
            off = m + (ki - 1) * wp + (kj - 1)
            acc = acc + jnp.dot(w_ref[0, t], x_ref[0, :, off:off + npad],
                                preferred_element_type=jnp.float32)
        pre = acc + nw_ref[...] * nplane_ref[0] + nb_ref[...]
        act = jnp.where(pre >= 0.0, pre, _LEAK * pre) * mask_ref[...]
        zeros = jnp.zeros((o_ch, m), jnp.float32)
        o_ref[0] = jnp.concatenate([zeros, act, zeros], axis=1).astype(o_ref.dtype)

    return kernel


def conv3x3_mod_noise_lrelu(x_ext, wmod9, nplane, nw, nb, mask, w_img):
    # x_ext: (B, C, Next); wmod9: (B, 9, O, C); nplane: (B, 1, Npad)
    # nw/nb: (O, 1); mask: (1, Npad)  ->  (B, O, Next)
    B, C, next_ = x_ext.shape
    O = wmod9.shape[2]
    npad = mask.shape[1]
    kernel = _make_conv3x3_kernel(w_img + 2)
    # TODO(synk): at production resolutions, tile the flat spatial axis with a
    # +/-(W+3) halo (manual DMA) instead of whole-plane-per-batch blocks.
    return pl.pallas_call(
        kernel,
        out_shape=jax.ShapeDtypeStruct((B, O, next_), x_ext.dtype),
        grid=(B,),
        in_specs=[
            pl.BlockSpec((1, C, next_), lambda b: (b, 0, 0)),
            pl.BlockSpec((1, 9, O, C), lambda b: (b, 0, 0, 0)),
            pl.BlockSpec((1, 1, npad), lambda b: (b, 0, 0)),
            pl.BlockSpec((O, 1), lambda b: (0, 0)),
            pl.BlockSpec((O, 1), lambda b: (0, 0)),
            pl.BlockSpec((1, npad), lambda b: (0, 0)),
        ],
        out_specs=pl.BlockSpec((1, O, next_), lambda b: (b, 0, 0)),
        compiler_params=pltpu.CompilerParams(
            dimension_semantics=("parallel",),
            vmem_limit_bytes=_VMEM_LIMIT),
    )(x_ext, wmod9, nplane, nw, nb, mask)


# ----------------------------------------------------------------------------
# Kernel 3: RGB 1x1 modulated conv (demod=False) with hoisted style, HW tiling
# and a separate no-prev_rgb variant (no zeros tensor is ever DMA'd).
# ----------------------------------------------------------------------------
def _rgb_conv_prev_kernel(x_ref, mod_ref, prev_ref, o_ref):
    y = jnp.dot(mod_ref[0], x_ref[0], preferred_element_type=jnp.float32)
    o_ref[0] = (y + prev_ref[0]).astype(o_ref.dtype)


def _rgb_conv_kernel(x_ref, mod_ref, o_ref):
    y = jnp.dot(mod_ref[0], x_ref[0], preferred_element_type=jnp.float32)
    o_ref[0] = y.astype(o_ref.dtype)


def rgb_conv1x1(x, mod, prev=None):
    # x: (B, C, H, W); mod: (B, O, C); prev: (B, O, H, W) or None
    B, C, H, W = x.shape
    O = mod.shape[1]
    hw = H * W
    t_hw = _pick_hw_tile(hw)
    nt = hw // t_hw
    x_flat = x.reshape(B, C, hw)
    common = dict(
        out_shape=jax.ShapeDtypeStruct((B, O, hw), x.dtype),
        grid=(B, nt),
        out_specs=pl.BlockSpec((1, O, t_hw), lambda b, t: (b, 0, t)),
        compiler_params=pltpu.CompilerParams(
            dimension_semantics=("parallel", "parallel"),
            vmem_limit_bytes=_VMEM_LIMIT),
    )
    x_spec = pl.BlockSpec((1, C, t_hw), lambda b, t: (b, 0, t))
    mod_spec = pl.BlockSpec((1, O, C), lambda b, t: (b, 0, 0))
    if prev is None:
        out = pl.pallas_call(_rgb_conv_kernel,
                             in_specs=[x_spec, mod_spec], **common)(x_flat, mod)
    else:
        prev_spec = pl.BlockSpec((1, O, t_hw), lambda b, t: (b, 0, t))
        out = pl.pallas_call(_rgb_conv_prev_kernel,
                             in_specs=[x_spec, mod_spec, prev_spec],
                             **common)(x_flat, mod, prev.reshape(B, O, hw))
    return out.reshape(B, O, H, W)


# ----------------------------------------------------------------------------
# Kernel 4: fused bilinear x2 upsample + reflect-pad + [1,2,1]x[1,2,1]/16 blur.
# Computed entirely in polyphase space (no interleaving inside the kernel);
# the intermediate upsampled image never touches HBM.
# ----------------------------------------------------------------------------
def _shift_clamp_prev(x, axis):  # z[k] = x[max(k-1, 0)]
    n = x.shape[axis]
    return jnp.concatenate([lax.slice_in_dim(x, 0, 1, axis=axis),
                            lax.slice_in_dim(x, 0, n - 1, axis=axis)], axis=axis)


def _shift_clamp_next(x, axis):  # z[k] = x[min(k+1, n-1)]
    n = x.shape[axis]
    return jnp.concatenate([lax.slice_in_dim(x, 1, n, axis=axis),
                            lax.slice_in_dim(x, n - 1, n, axis=axis)], axis=axis)


def _fused_up_blur_1d(x, axis):
    # bilinear x2 upsample then (1,2,1) blur (un-normalized, x4), polyphase.
    e = 0.25 * _shift_clamp_prev(x, axis) + 0.75 * x       # u[2i]
    o = 0.75 * x + 0.25 * _shift_clamp_next(x, axis)       # u[2i+1]
    # reflect-pad of u: u[-1] -> u[1] == o[0];  u[2n] -> u[2n-2] == e[n-1]
    v0 = _shift_clamp_prev(o, axis) + 2.0 * e + o           # 4 * v[2i]
    v1 = e + 2.0 * o + _shift_clamp_next(e, axis)           # 4 * v[2i+1]
    return v0, v1


def _upsample_blur_kernel(x_ref, o_ref):
    # x_ref: (1, C, H, W) -> o_ref: (1, 2, 2, C, H, W), polyphase output with
    # o_ref[0, p, q, c, i, j] == blur(upsample2x(x))[c, 2i+p, 2j+q]
    x = x_ref[0].astype(jnp.float32)
    v0w, v1w = _fused_up_blur_1d(x, axis=2)                 # along W
    for q, vw in ((0, v0w), (1, v1w)):
        p0, p1 = _fused_up_blur_1d(vw, axis=1)              # along H
        o_ref[0, 0, q] = (p0 * (1.0 / 16.0)).astype(o_ref.dtype)
        o_ref[0, 1, q] = (p1 * (1.0 / 16.0)).astype(o_ref.dtype)


def upsample_blur(x):
    B, C, H, W = x.shape
    out6 = pl.pallas_call(
        _upsample_blur_kernel,
        out_shape=jax.ShapeDtypeStruct((B, 2, 2, C, H, W), x.dtype),
        grid=(B,),
        in_specs=[pl.BlockSpec((1, C, H, W), lambda b: (b, 0, 0, 0))],
        out_specs=pl.BlockSpec((1, 2, 2, C, H, W),
                               lambda b: (b, 0, 0, 0, 0, 0)),
        compiler_params=pltpu.CompilerParams(
            dimension_semantics=("parallel",),
            vmem_limit_bytes=_VMEM_LIMIT),
    )(x)
    # phase -> interleaved layout: wrapper-side layout plumbing only
    return out6.transpose(0, 3, 4, 1, 5, 2).reshape(B, C, 2 * H, 2 * W)


# ----------------------------------------------------------------------------
# GeneratorBlock forward
# ----------------------------------------------------------------------------
def generator_block_forward(params, x, prev_rgb, istyle, inoise,
                            upsample=True, upsample_rgb=True):
    if upsample:
        x = upsample2x_bilinear(x)
    B, c_in, H, W = x.shape
    assert H == W, "GeneratorBlock noise permute requires square feature maps"
    filters = params["conv1_w"].shape[0]
    npad = (H + 2) * (W + 2)
    m = W + 3

    # ---- hoisted tiny linears + weight modulation (JAX wrapper) ----
    style1 = istyle @ params["style1_w"].T + params["style1_b"]            # (B, Cin)
    style2 = istyle @ params["style2_w"].T + params["style2_b"]            # (B, F)
    style_rgb = istyle @ params["rgb_style_w"].T + params["rgb_style_b"]   # (B, F)

    w1 = modulated_weights(params["conv1_w"], style1, demod=True)          # (B,F,Cin,3,3)
    w1 = jnp.transpose(w1, (0, 3, 4, 1, 2)).reshape(B, 9, filters, c_in)
    w2 = modulated_weights(params["conv2_w"], style2, demod=True)          # (B,F,F,3,3)
    w2 = jnp.transpose(w2, (0, 3, 4, 1, 2)).reshape(B, 9, filters, filters)
    mod_rgb = params["rgb_conv_w"][None, :, :, 0, 0] * (style_rgb[:, None, :] + 1.0)

    # ---- noise plane (the reference .permute(0,3,2,1) transposes H and W) ----
    noise = inoise[:, :H, :W, 0]                                           # (B, H, W)
    nplane = jnp.transpose(noise, (0, 2, 1))
    nplane = jnp.pad(nplane, ((0, 0), (1, 1), (1, 1))).reshape(B, 1, npad)

    mask_np = np.zeros((H + 2, W + 2), np.float32)
    mask_np[1:-1, 1:-1] = 1.0
    mask = jnp.asarray(mask_np.reshape(1, npad))

    nw1 = params["noise1_w"].reshape(filters, 1)
    nb1 = params["noise1_b"].reshape(filters, 1)
    nw2 = params["noise2_w"].reshape(filters, 1)
    nb2 = params["noise2_b"].reshape(filters, 1)

    # ---- conv1 -> conv2 (Pallas), chained in the padded-flat layout ----
    x_ext = _to_ext_flat(x, m)                                             # (B,Cin,Next)
    a1_ext = conv3x3_mod_noise_lrelu(x_ext, w1, nplane, nw1, nb1, mask, W)
    a2_ext = conv3x3_mod_noise_lrelu(a1_ext, w2, nplane, nw2, nb2, mask, W)

    x_out = a2_ext[:, :, m:m + npad].reshape(B, filters, H + 2, W + 2)[:, :, 1:-1, 1:-1]

    # ---- RGB block: hoisted-style 1x1 conv (+ prev), fused upsample+blur ----
    rgb = rgb_conv1x1(x_out, mod_rgb, prev_rgb)
    if upsample_rgb:
        rgb = upsample_blur(rgb)
    return x_out, rgb


# ----------------------------------------------------------------------------
# Pure-JAX reference (independent implementation, HIGHEST precision)
# ----------------------------------------------------------------------------
def _lrelu(v):
    return jnp.where(v >= 0.0, v, _LEAK * v)


def _conv_mod_ref(x, w, style, demod):
    B, C, H, W = x.shape
    O, _, kh, kw = w.shape
    wmod = modulated_weights(w, style, demod)
    pad = (kh - 1) // 2
    xp = jnp.pad(x, ((0, 0), (0, 0), (pad, pad), (pad, pad)))
    out = jnp.zeros((B, O, H, W), jnp.float32)
    for ki in range(kh):
        for kj in range(kw):
            out = out + jnp.einsum("boc,bchw->bohw", wmod[:, :, :, ki, kj],
                                   xp[:, :, ki:ki + H, kj:kj + W],
                                   precision=lax.Precision.HIGHEST)
    return out


def _blur_ref(y):
    yp = jnp.pad(y, ((0, 0), (0, 0), (1, 1), (1, 1)), mode="reflect")
    B, C, H, W = y.shape
    wts = [[1.0, 2.0, 1.0], [2.0, 4.0, 2.0], [1.0, 2.0, 1.0]]
    acc = jnp.zeros_like(y)
    for di in range(3):
        for dj in range(3):
            acc = acc + (wts[di][dj] / 16.0) * yp[:, :, di:di + H, dj:dj + W]
    return acc


def reference_forward(params, x, prev_rgb, istyle, inoise,
                      upsample=True, upsample_rgb=True):
    if upsample:
        x = upsample2x_bilinear(x)
    B, _, H, W = x.shape
    noise = inoise[:, :H, :W, :]
    n1 = noise[..., 0:1] * params["noise1_w"][None, None, None, :, 0] + params["noise1_b"]
    n1 = jnp.transpose(n1, (0, 3, 2, 1))
    n2 = noise[..., 0:1] * params["noise2_w"][None, None, None, :, 0] + params["noise2_b"]
    n2 = jnp.transpose(n2, (0, 3, 2, 1))

    style1 = istyle @ params["style1_w"].T + params["style1_b"]
    h1 = _lrelu(_conv_mod_ref(x, params["conv1_w"], style1, True) + n1)
    style2 = istyle @ params["style2_w"].T + params["style2_b"]
    h2 = _lrelu(_conv_mod_ref(h1, params["conv2_w"], style2, True) + n2)

    style_rgb = istyle @ params["rgb_style_w"].T + params["rgb_style_b"]
    rgb = _conv_mod_ref(h2, params["rgb_conv_w"], style_rgb, False)
    if prev_rgb is not None:
        rgb = rgb + prev_rgb
    if upsample_rgb:
        rgb = _blur_ref(upsample2x_bilinear(rgb))
    return h2, rgb


if __name__ == "__main__":
    B = 2
    LATENT = 32
    CIN = 8        # input_channels
    FILT = 8       # filters
    H0 = W0 = 8    # pre-upsample resolution: convs run at 16x16, rgb out 32x32
    OUT = 3        # rgba=False

    key = jax.random.PRNGKey(0)
    ks = jax.random.split(key, 16)

    def uni(k, shape, lim):
        return jax.random.uniform(k, shape, jnp.float32, -lim, lim)

    lim_l = 1.0 / math.sqrt(LATENT)
    params = {
        "style1_w": uni(ks[0], (CIN, LATENT), lim_l),
        "style1_b": uni(ks[1], (CIN,), lim_l),
        "style2_w": uni(ks[2], (FILT, LATENT), lim_l),
        "style2_b": uni(ks[3], (FILT,), lim_l),
        "rgb_style_w": uni(ks[4], (FILT, LATENT), lim_l),
        "rgb_style_b": uni(ks[5], (FILT,), lim_l),
        "noise1_w": uni(ks[6], (FILT, 1), 1.0),
        "noise1_b": uni(ks[7], (FILT,), 1.0),
        "noise2_w": uni(ks[8], (FILT, 1), 1.0),
        "noise2_b": uni(ks[9], (FILT,), 1.0),
        "conv1_w": jax.random.normal(ks[10], (FILT, CIN, 3, 3), jnp.float32)
                   * math.sqrt(2.0 / (CIN * 9)),
        "conv2_w": jax.random.normal(ks[11], (FILT, FILT, 3, 3), jnp.float32)
                   * math.sqrt(2.0 / (FILT * 9)),
        "rgb_conv_w": jax.random.normal(ks[12], (OUT, FILT, 1, 1), jnp.float32)
                      * math.sqrt(2.0 / FILT),
    }

    x = jax.random.normal(ks[13], (B, CIN, H0, W0), jnp.float32)
    prev_rgb = jax.random.normal(ks[14], (B, OUT, 2 * H0, 2 * W0), jnp.float32)
    ksy, kn = jax.random.split(ks[15])
    istyle = jax.random.normal(ksy, (B, LATENT), jnp.float32)
    inoise = jax.random.normal(kn, (B, 4 * H0, 4 * W0, 1), jnp.float32)

    fwd = jax.jit(generator_block_forward,
                  static_argnames=("upsample", "upsample_rgb"))

    x_out, rgb = fwd(params, x, prev_rgb, istyle, inoise,
                     upsample=True, upsample_rgb=True)
    jax.block_until_ready((x_out, rgb))

    x_ref, rgb_ref = reference_forward(params, x, prev_rgb, istyle, inoise,
                                       upsample=True, upsample_rgb=True)
    assert x_out.shape == (B, FILT, 2 * H0, 2 * W0), x_out.shape
    assert rgb.shape == (B, OUT, 4 * H0, 4 * W0), rgb.shape
    # tolerance covers potential bf16-pass MXU accumulation; typical err ~1e-5
    err_x = float(jnp.max(jnp.abs(x_out - x_ref)))
    err_rgb = float(jnp.max(jnp.abs(rgb - rgb_ref)))
    assert err_x < 2e-2, f"feature map mismatch: max abs err {err_x}"
    assert err_rgb < 2e-2, f"rgb mismatch: max abs err {err_rgb}"

    # also exercise the no-prev_rgb kernel variant (no zeros tensor DMA'd)
    x_out2, rgb2 = fwd(params, x, None, istyle, inoise,
                       upsample=True, upsample_rgb=True)
    jax.block_until_ready((x_out2, rgb2))
    _, rgb2_ref = reference_forward(params, x, None, istyle, inoise,
                                    upsample=True, upsample_rgb=True)
    err2 = float(jnp.max(jnp.abs(rgb2 - rgb2_ref)))
    assert err2 < 2e-2, f"rgb (no prev) mismatch: max abs err {err2}"

    print("KERNEL_OK")
</pallas_src>

<mosaic_0001>
module attributes {stable_mosaic.version = 11 : i64} {
  func.func @kernel(%arg0: i32, %arg1: memref<1x8x362xf32, #tpu.memory_space<vmem>>, %arg2: memref<1x9x8x8xf32, #tpu.memory_space<vmem>>, %arg3: memref<1x1x324xf32, #tpu.memory_space<vmem>>, %arg4: memref<8x1xf32, #tpu.memory_space<vmem>>, %arg5: memref<8x1xf32, #tpu.memory_space<vmem>>, %arg6: memref<1x324xf32, #tpu.memory_space<vmem>>, %arg7: memref<1x8x362xf32, #tpu.memory_space<vmem>>) attributes {dimension_semantics = [#tpu.dimension_semantics<parallel>], iteration_bounds = array<i64: 2>, scalar_prefetch = 0 : i64, scratch_operands = 0 : i64, tpu.core_type = #tpu.core_type<tc>, window_params = [{transform_indices = @transform_0, window_bounds = array<i64: 1, 8, 362>}, {transform_indices = @transform_1, window_bounds = array<i64: 1, 9, 8, 8>}, {transform_indices = @transform_2, window_bounds = array<i64: 1, 1, 324>}, {pipeline_mode = #tpu.pipeline_mode<synchronous>, transform_indices = @transform_3, window_bounds = array<i64: 8, 1>}, {pipeline_mode = #tpu.pipeline_mode<synchronous>, transform_indices = @transform_4, window_bounds = array<i64: 8, 1>}, {pipeline_mode = #tpu.pipeline_mode<synchronous>, transform_indices = @transform_5, window_bounds = array<i64: 1, 324>}, {transform_indices = @transform_6, window_bounds = array<i64: 1, 8, 362>}]} {
    %cst = arith.constant 0.000000e+00 : f32
    %0 = vector.broadcast %cst : f32 to vector<8x324xf32>
    %c0 = arith.constant 0 : index
    %c0_0 = arith.constant 0 : index
    %c0_1 = arith.constant 0 : index
    %c0_2 = arith.constant 0 : index
    %1 = vector.load %arg2[%c0, %c0_0, %c0_1, %c0_2] : memref<1x9x8x8xf32, #tpu.memory_space<vmem>>, vector<1x1x8x8xf32>
    %2 = vector.shape_cast %1 : vector<1x1x8x8xf32> to vector<8x8xf32>
    %c0_3 = arith.constant 0 : index
    %c0_4 = arith.constant 0 : index
    %c0_5 = arith.constant 0 : index
    %3 = vector.load %arg1[%c0_3, %c0_4, %c0_5] : memref<1x8x362xf32, #tpu.memory_space<vmem>>, vector<1x8x324xf32>
    %4 = vector.shape_cast %3 : vector<1x8x324xf32> to vector<8x324xf32>
    %cst_6 = arith.constant dense<0.000000e+00> : vector<8x324xf32>
    %5 = tpu.matmul %2, %4, %cst_6 {dimension_numbers = #tpu.dot_dimension_numbers<[1], [0], [0], [1], [0, 0, 1, 1], [], []>} : vector<8x8xf32>, vector<8x324xf32>, vector<8x324xf32> -> vector<8x324xf32>
    %6 = arith.addf %0, %5 : vector<8x324xf32>
    %c0_7 = arith.constant 0 : index
    %c1 = arith.constant 1 : index
    %c0_8 = arith.constant 0 : index
    %c0_9 = arith.constant 0 : index
    %7 = vector.load %arg2[%c0_7, %c1, %c0_8, %c0_9] : memref<1x9x8x8xf32, #tpu.memory_space<vmem>>, vector<1x1x8x8xf32>
    %8 = vector.shape_cast %7 : vector<1x1x8x8xf32> to vector<8x8xf32>
    %c0_10 = arith.constant 0 : index
    %c0_11 = arith.constant 0 : index
    %c1_12 = arith.constant 1 : index
    %9 = vector.load %arg1[%c0_10, %c0_11, %c1_12] : memref<1x8x362xf32, #tpu.memory_space<vmem>>, vector<1x8x324xf32>
    %10 = vector.shape_cast %9 : vector<1x8x324xf32> to vector<8x324xf32>
    %cst_13 = arith.constant dense<0.000000e+00> : vector<8x324xf32>
    %11 = tpu.matmul %8, %10, %cst_13 {dimension_numbers = #tpu.dot_dimension_numbers<[1], [0], [0], [1], [0, 0, 1, 1], [], []>} : vector<8x8xf32>, vector<8x324xf32>, vector<8x324xf32> -> vector<8x324xf32>
    %12 = arith.addf %6, %11 : vector<8x324xf32>
    %c0_14 = arith.constant 0 : index
    %c2 = arith.constant 2 : index
    %c0_15 = arith.constant 0 : index
    %c0_16 = arith.constant 0 : index
    %13 = vector.load %arg2[%c0_14, %c2, %c0_15, %c0_16] : memref<1x9x8x8xf32, #tpu.memory_space<vmem>>, vector<1x1x8x8xf32>
    %14 = vector.shape_cast %13 : vector<1x1x8x8xf32> to vector<8x8xf32>
    %c0_17 = arith.constant 0 : index
    %c0_18 = arith.constant 0 : index
    %c2_19 = arith.constant 2 : index
    %15 = vector.load %arg1[%c0_17, %c0_18, %c2_19] : memref<1x8x362xf32, #tpu.memory_space<vmem>>, vector<1x8x324xf32>
    %16 = vector.shape_cast %15 : vector<1x8x324xf32> to vector<8x324xf32>
    %cst_20 = arith.constant dense<0.000000e+00> : vector<8x324xf32>
    %17 = tpu.matmul %14, %16, %cst_20 {dimension_numbers = #tpu.dot_dimension_numbers<[1], [0], [0], [1], [0, 0, 1, 1], [], []>} : vector<8x8xf32>, vector<8x324xf32>, vector<8x324xf32> -> vector<8x324xf32>
    %18 = arith.addf %12, %17 : vector<8x324xf32>
    %c0_21 = arith.constant 0 : index
    %c3 = arith.constant 3 : index
    %c0_22 = arith.constant 0 : index
    %c0_23 = arith.constant 0 : index
    %19 = vector.load %arg2[%c0_21, %c3, %c0_22, %c0_23] : memref<1x9x8x8xf32, #tpu.memory_space<vmem>>, vector<1x1x8x8xf32>
    %20 = vector.shape_cast %19 : vector<1x1x8x8xf32> to vector<8x8xf32>
    %c0_24 = arith.constant 0 : index
    %c0_25 = arith.constant 0 : index
    %c18 = arith.constant 18 : index
    %21 = vector.load %arg1[%c0_24, %c0_25, %c18] : memref<1x8x362xf32, #tpu.memory_space<vmem>>, vector<1x8x324xf32>
    %22 = vector.shape_cast %21 : vector<1x8x324xf32> to vector<8x324xf32>
    %cst_26 = arith.constant dense<0.000000e+00> : vector<8x324xf32>
    %23 = tpu.matmul %20, %22, %cst_26 {dimension_numbers = #tpu.dot_dimension_numbers<[1], [0], [0], [1], [0, 0, 1, 1], [], []>} : vector<8x8xf32>, vector<8x324xf32>, vector<8x324xf32> -> vector<8x324xf32>
    %24 = arith.addf %18, %23 : vector<8x324xf32>
    %c0_27 = arith.constant 0 : index
    %c4 = arith.constant 4 : index
    %c0_28 = arith.constant 0 : index
    %c0_29 = arith.constant 0 : index
    %25 = vector.load %arg2[%c0_27, %c4, %c0_28, %c0_29] : memref<1x9x8x8xf32, #tpu.memory_space<vmem>>, vector<1x1x8x8xf32>
    %26 = vector.shape_cast %25 : vector<1x1x8x8xf32> to vector<8x8xf32>
    %c0_30 = arith.constant 0 : index
    %c0_31 = arith.constant 0 : index
    %c19 = arith.constant 19 : index
    %27 = vector.load %arg1[%c0_30, %c0_31, %c19] : memref<1x8x362xf32, #tpu.memory_space<vmem>>, vector<1x8x324xf32>
    %28 = vector.shape_cast %27 : vector<1x8x324xf32> to vector<8x324xf32>
    %cst_32 = arith.constant dense<0.000000e+00> : vector<8x324xf32>
    %29 = tpu.matmul %26, %28, %cst_32 {dimension_numbers = #tpu.dot_dimension_numbers<[1], [0], [0], [1], [0, 0, 1, 1], [], []>} : vector<8x8xf32>, vector<8x324xf32>, vector<8x324xf32> -> vector<8x324xf32>
    %30 = arith.addf %24, %29 : vector<8x324xf32>
    %c0_33 = arith.constant 0 : index
    %c5 = arith.constant 5 : index
    %c0_34 = arith.constant 0 : index
    %c0_35 = arith.constant 0 : index
    %31 = vector.load %arg2[%c0_33, %c5, %c0_34, %c0_35] : memref<1x9x8x8xf32, #tpu.memory_space<vmem>>, vector<1x1x8x8xf32>
    %32 = vector.shape_cast %31 : vector<1x1x8x8xf32> to vector<8x8xf32>
    %c0_36 = arith.constant 0 : index
    %c0_37 = arith.constant 0 : index
    %c20 = arith.constant 20 : index
    %33 = vector.load %arg1[%c0_36, %c0_37, %c20] : memref<1x8x362xf32, #tpu.memory_space<vmem>>, vector<1x8x324xf32>
    %34 = vector.shape_cast %33 : vector<1x8x324xf32> to vector<8x324xf32>
    %cst_38 = arith.constant dense<0.000000e+00> : vector<8x324xf32>
    %35 = tpu.matmul %32, %34, %cst_38 {dimension_numbers = #tpu.dot_dimension_numbers<[1], [0], [0], [1], [0, 0, 1, 1], [], []>} : vector<8x8xf32>, vector<8x324xf32>, vector<8x324xf32> -> vector<8x324xf32>
    %36 = arith.addf %30, %35 : vector<8x324xf32>
    %c0_39 = arith.constant 0 : index
    %c6 = arith.constant 6 : index
    %c0_40 = arith.constant 0 : index
    %c0_41 = arith.constant 0 : index
    %37 = vector.load %arg2[%c0_39, %c6, %c0_40, %c0_41] : memref<1x9x8x8xf32, #tpu.memory_space<vmem>>, vector<1x1x8x8xf32>
    %38 = vector.shape_cast %37 : vector<1x1x8x8xf32> to vector<8x8xf32>
    %c0_42 = arith.constant 0 : index
    %c0_43 = arith.constant 0 : index
    %c36 = arith.constant 36 : index
    %39 = vector.load %arg1[%c0_42, %c0_43, %c36] : memref<1x8x362xf32, #tpu.memory_space<vmem>>, vector<1x8x324xf32>
    %40 = vector.shape_cast %39 : vector<1x8x324xf32> to vector<8x324xf32>
    %cst_44 = arith.constant dense<0.000000e+00> : vector<8x324xf32>
    %41 = tpu.matmul %38, %40, %cst_44 {dimension_numbers = #tpu.dot_dimension_numbers<[1], [0], [0], [1], [0, 0, 1, 1], [], []>} : vector<8x8xf32>, vector<8x324xf32>, vector<8x324xf32> -> vector<8x324xf32>
    %42 = arith.addf %36, %41 : vector<8x324xf32>
    %c0_45 = arith.constant 0 : index
    %c7 = arith.constant 7 : index
    %c0_46 = arith.constant 0 : index
    %c0_47 = arith.constant 0 : index
    %43 = vector.load %arg2[%c0_45, %c7, %c0_46, %c0_47] : memref<1x9x8x8xf32, #tpu.memory_space<vmem>>, vector<1x1x8x8xf32>
    %44 = vector.shape_cast %43 : vector<1x1x8x8xf32> to vector<8x8xf32>
    %c0_48 = arith.constant 0 : index
    %c0_49 = arith.constant 0 : index
    %c37 = arith.constant 37 : index
    %45 = vector.load %arg1[%c0_48, %c0_49, %c37] : memref<1x8x362xf32, #tpu.memory_space<vmem>>, vector<1x8x324xf32>
    %46 = vector.shape_cast %45 : vector<1x8x324xf32> to vector<8x324xf32>
    %cst_50 = arith.constant dense<0.000000e+00> : vector<8x324xf32>
    %47 = tpu.matmul %44, %46, %cst_50 {dimension_numbers = #tpu.dot_dimension_numbers<[1], [0], [0], [1], [0, 0, 1, 1], [], []>} : vector<8x8xf32>, vector<8x324xf32>, vector<8x324xf32> -> vector<8x324xf32>
    %48 = arith.addf %42, %47 : vector<8x324xf32>
    %c0_51 = arith.constant 0 : index
    %c8 = arith.constant 8 : index
    %c0_52 = arith.constant 0 : index
    %c0_53 = arith.constant 0 : index
    %49 = vector.load %arg2[%c0_51, %c8, %c0_52, %c0_53] : memref<1x9x8x8xf32, #tpu.memory_space<vmem>>, vector<1x1x8x8xf32>
    %50 = vector.shape_cast %49 : vector<1x1x8x8xf32> to vector<8x8xf32>
    %c0_54 = arith.constant 0 : index
    %c0_55 = arith.constant 0 : index
    %c38 = arith.constant 38 : index
    %51 = vector.load %arg1[%c0_54, %c0_55, %c38] : memref<1x8x362xf32, #tpu.memory_space<vmem>>, vector<1x8x324xf32>
    %52 = vector.shape_cast %51 : vector<1x8x324xf32> to vector<8x324xf32>
    %cst_56 = arith.constant dense<0.000000e+00> : vector<8x324xf32>
    %53 = tpu.matmul %50, %52, %cst_56 {dimension_numbers = #tpu.dot_dimension_numbers<[1], [0], [0], [1], [0, 0, 1, 1], [], []>} : vector<8x8xf32>, vector<8x324xf32>, vector<8x324xf32> -> vector<8x324xf32>
    %54 = arith.addf %48, %53 : vector<8x324xf32>
    %c0_57 = arith.constant 0 : index
    %c0_58 = arith.constant 0 : index
    %55 = vector.load %arg4[%c0_57, %c0_58] : memref<8x1xf32, #tpu.memory_space<vmem>>, vector<8x1xf32>
    %c0_59 = arith.constant 0 : index
    %c0_60 = arith.constant 0 : index
    %c0_61 = arith.constant 0 : index
    %56 = vector.load %arg3[%c0_59, %c0_60, %c0_61] : memref<1x1x324xf32, #tpu.memory_space<vmem>>, vector<1x1x324xf32>
    %57 = vector.shape_cast %56 : vector<1x1x324xf32> to vector<1x324xf32>
    %58 = vector.broadcast %55 : vector<8x1xf32> to vector<8x324xf32>
    %59 = vector.broadcast %57 : vector<1x324xf32> to vector<8x324xf32>
    %60 = arith.mulf %58, %59 : vector<8x324xf32>
    %61 = arith.addf %54, %60 : vector<8x324xf32>
    %c0_62 = arith.constant 0 : index
    %c0_63 = arith.constant 0 : index
    %62 = vector.load %arg5[%c0_62, %c0_63] : memref<8x1xf32, #tpu.memory_space<vmem>>, vector<8x1xf32>
    %63 = vector.broadcast %62 : vector<8x1xf32> to vector<8x324xf32>
    %64 = arith.addf %61, %63 : vector<8x324xf32>
    %cst_64 = arith.constant 0.000000e+00 : f32
    %65 = vector.broadcast %cst_64 : f32 to vector<8x324xf32>
    %66 = arith.cmpf oge, %64, %65 : vector<8x324xf32>
    %cst_65 = arith.constant 2.000000e-01 : f32
    %67 = vector.broadcast %cst_65 : f32 to vector<8x324xf32>
    %68 = arith.mulf %67, %64 : vector<8x324xf32>
    %69 = arith.select %66, %64, %68 : vector<8x324xi1>, vector<8x324xf32>
    %c0_66 = arith.constant 0 : index
    %c0_67 = arith.constant 0 : index
    %70 = vector.load %arg6[%c0_66, %c0_67] : memref<1x324xf32, #tpu.memory_space<vmem>>, vector<1x324xf32>
    %71 = vector.broadcast %70 : vector<1x324xf32> to vector<8x324xf32>
    %72 = arith.mulf %69, %71 : vector<8x324xf32>
    %cst_68 = arith.constant 0.000000e+00 : f32
    %73 = vector.broadcast %cst_68 : f32 to vector<8x19xf32>
    %74 = tpu.concatenate %73, %72, %73 in 1 : vector<8x19xf32>, vector<8x324xf32>, vector<8x19xf32> -> vector<8x362xf32>
    %c0_69 = arith.constant 0 : index
    %c0_70 = arith.constant 0 : index
    %c0_71 = arith.constant 0 : index
    %75 = vector.load %arg7[%c0_69, %c0_70, %c0_71] : memref<1x8x362xf32, #tpu.memory_space<vmem>>, vector<1x8x362xf32>
    %76 = vector.shape_cast %75 : vector<1x8x362xf32> to vector<8x362xf32>
    %77 = vector.shape_cast %74 : vector<8x362xf32> to vector<1x8x362xf32>
    tpu.vector_store %arg7[%c0_69, %c0_70, %c0_71], %77 {strides = array<i32>} : memref<1x8x362xf32, #tpu.memory_space<vmem>>, vector<1x8x362xf32>,
    return
  }
  func.func @transform_0(%arg0: i32) -> (i32, i32, i32) {
    %c0_i32 = arith.constant 0 : i32
    %c0_i32_0 = arith.constant 0 : i32
    %c0_i32_1 = arith.constant 0 : i32
    return %arg0, %c0_i32, %c0_i32_0 : i32, i32, i32
  }
  func.func @transform_1(%arg0: i32) -> (i32, i32, i32, i32) {
    %c0_i32 = arith.constant 0 : i32
    %c0_i32_0 = arith.constant 0 : i32
    %c0_i32_1 = arith.constant 0 : i32
    %c0_i32_2 = arith.constant 0 : i32
    return %arg0, %c0_i32, %c0_i32_0, %c0_i32_1 : i32, i32, i32, i32
  }
  func.func @transform_2(%arg0: i32) -> (i32, i32, i32) {
    %c0_i32 = arith.constant 0 : i32
    %c0_i32_0 = arith.constant 0 : i32
    %c0_i32_1 = arith.constant 0 : i32
    return %arg0, %c0_i32, %c0_i32_0 : i32, i32, i32
  }
  func.func @transform_3(%arg0: i32) -> (i32, i32) {
    %c0_i32 = arith.constant 0 : i32
    %c0_i32_0 = arith.constant 0 : i32
    %c0_i32_1 = arith.constant 0 : i32
    return %c0_i32, %c0_i32_0 : i32, i32
  }
  func.func @transform_4(%arg0: i32) -> (i32, i32) {
    %c0_i32 = arith.constant 0 : i32
    %c0_i32_0 = arith.constant 0 : i32
    %c0_i32_1 = arith.constant 0 : i32
    return %c0_i32, %c0_i32_0 : i32, i32
  }
  func.func @transform_5(%arg0: i32) -> (i32, i32) {
    %c0_i32 = arith.constant 0 : i32
    %c0_i32_0 = arith.constant 0 : i32
    %c0_i32_1 = arith.constant 0 : i32
    return %c0_i32, %c0_i32_0 : i32, i32
  }
  func.func @transform_6(%arg0: i32) -> (i32, i32, i32) {
    %c0_i32 = arith.constant 0 : i32
    %c0_i32_0 = arith.constant 0 : i32
    %c0_i32_1 = arith.constant 0 : i32
    return %arg0, %c0_i32, %c0_i32_0 : i32, i32, i32
  }
}

module attributes {stable_mosaic.version = 11 : i64} {
  func.func @_upsample_blur_kernel(%arg0: i32, %arg1: memref<1x3x16x16xf32, #tpu.memory_space<vmem>>, %arg2: memref<1x2x2x3x16x16xf32, #tpu.memory_space<vmem>>) attributes {dimension_semantics = [#tpu.dimension_semantics<parallel>], iteration_bounds = array<i64: 2>, scalar_prefetch = 0 : i64, scratch_operands = 0 : i64, tpu.core_type = #tpu.core_type<tc>, window_params = [{transform_indices = @transform_0, window_bounds = array<i64: 1, 3, 16, 16>}, {transform_indices = @transform_1, window_bounds = array<i64: 1, 2, 2, 3, 16, 16>}]} {
    %c0 = arith.constant 0 : index
    %c0_0 = arith.constant 0 : index
    %c0_1 = arith.constant 0 : index
    %c0_2 = arith.constant 0 : index
    %0 = vector.load %arg1[%c0, %c0_0, %c0_1, %c0_2] : memref<1x3x16x16xf32, #tpu.memory_space<vmem>>, vector<1x3x16x16xf32>
    %1 = vector.shape_cast %0 : vector<1x3x16x16xf32> to vector<3x16x16xf32>
    %2 = vector.extract_strided_slice %1 {offsets = [0, 0, 0], sizes = [3, 16, 1], strides = [1, 1, 1]} : vector<3x16x16xf32> to vector<3x16x1xf32>
    %3 = vector.extract_strided_slice %1 {offsets = [0, 0, 0], sizes = [3, 16, 15], strides = [1, 1, 1]} : vector<3x16x16xf32> to vector<3x16x15xf32>
    %4 = tpu.concatenate %2, %3 in 2 : vector<3x16x1xf32>, vector<3x16x15xf32> -> vector<3x16x16xf32>
    %cst = arith.constant 2.500000e-01 : f32
    %5 = vector.broadcast %cst : f32 to vector<3x16x16xf32>
    %6 = arith.mulf %5, %4 : vector<3x16x16xf32>
    %cst_3 = arith.constant 7.500000e-01 : f32
    %7 = vector.broadcast %cst_3 : f32 to vector<3x16x16xf32>
    %8 = arith.mulf %7, %1 : vector<3x16x16xf32>
    %9 = arith.addf %6, %8 : vector<3x16x16xf32>
    %cst_4 = arith.constant 7.500000e-01 : f32
    %10 = vector.broadcast %cst_4 : f32 to vector<3x16x16xf32>
    %11 = arith.mulf %10, %1 : vector<3x16x16xf32>
    %12 = vector.extract_strided_slice %1 {offsets = [0, 0, 1], sizes = [3, 16, 15], strides = [1, 1, 1]} : vector<3x16x16xf32> to vector<3x16x15xf32>
    %13 = vector.extract_strided_slice %1 {offsets = [0, 0, 15], sizes = [3, 16, 1], strides = [1, 1, 1]} : vector<3x16x16xf32> to vector<3x16x1xf32>
    %14 = tpu.concatenate %12, %13 in 2 : vector<3x16x15xf32>, vector<3x16x1xf32> -> vector<3x16x16xf32>
    %cst_5 = arith.constant 2.500000e-01 : f32
    %15 = vector.broadcast %cst_5 : f32 to vector<3x16x16xf32>
    %16 = arith.mulf %15, %14 : vector<3x16x16xf32>
    %17 = arith.addf %11, %16 : vector<3x16x16xf32>
    %18 = vector.extract_strided_slice %17 {offsets = [0, 0, 0], sizes = [3, 16, 1], strides = [1, 1, 1]} : vector<3x16x16xf32> to vector<3x16x1xf32>
    %19 = vector.extract_strided_slice %17 {offsets = [0, 0, 0], sizes = [3, 16, 15], strides = [1, 1, 1]} : vector<3x16x16xf32> to vector<3x16x15xf32>
    %20 = tpu.concatenate %18, %19 in 2 : vector<3x16x1xf32>, vector<3x16x15xf32> -> vector<3x16x16xf32>
    %cst_6 = arith.constant 2.000000e+00 : f32
    %21 = vector.broadcast %cst_6 : f32 to vector<3x16x16xf32>
    %22 = arith.mulf %21, %9 : vector<3x16x16xf32>
    %23 = arith.addf %20, %22 : vector<3x16x16xf32>
    %24 = arith.addf %23, %17 : vector<3x16x16xf32>
    %cst_7 = arith.constant 2.000000e+00 : f32
    %25 = vector.broadcast %cst_7 : f32 to vector<3x16x16xf32>
    %26 = arith.mulf %25, %17 : vector<3x16x16xf32>
    %27 = arith.addf %9, %26 : vector<3x16x16xf32>
    %28 = vector.extract_strided_slice %9 {offsets = [0, 0, 1], sizes = [3, 16, 15], strides = [1, 1, 1]} : vector<3x16x16xf32> to vector<3x16x15xf32>
    %29 = vector.extract_strided_slice %9 {offsets = [0, 0, 15], sizes = [3, 16, 1], strides = [1, 1, 1]} : vector<3x16x16xf32> to vector<3x16x1xf32>
    %30 = tpu.concatenate %28, %29 in 2 : vector<3x16x15xf32>, vector<3x16x1xf32> -> vector<3x16x16xf32>
    %31 = arith.addf %27, %30 : vector<3x16x16xf32>
    %32 = vector.extract_strided_slice %24 {offsets = [0, 0, 0], sizes = [3, 1, 16], strides = [1, 1, 1]} : vector<3x16x16xf32> to vector<3x1x16xf32>
    %33 = vector.extract_strided_slice %24 {offsets = [0, 0, 0], sizes = [3, 15, 16], strides = [1, 1, 1]} : vector<3x16x16xf32> to vector<3x15x16xf32>
    %34 = tpu.concatenate %32, %33 in 1 : vector<3x1x16xf32>, vector<3x15x16xf32> -> vector<3x16x16xf32>
    %cst_8 = arith.constant 2.500000e-01 : f32
    %35 = vector.broadcast %cst_8 : f32 to vector<3x16x16xf32>
    %36 = arith.mulf %35, %34 : vector<3x16x16xf32>
    %cst_9 = arith.constant 7.500000e-01 : f32
    %37 = vector.broadcast %cst_9 : f32 to vector<3x16x16xf32>
    %38 = arith.mulf %37, %24 : vector<3x16x16xf32>
    %39 = arith.addf %36, %38 : vector<3x16x16xf32>
    %cst_10 = arith.constant 7.500000e-01 : f32
    %40 = vector.broadcast %cst_10 : f32 to vector<3x16x16xf32>
    %41 = arith.mulf %40, %24 : vector<3x16x16xf32>
    %42 = vector.extract_strided_slice %24 {offsets = [0, 1, 0], sizes = [3, 15, 16], strides = [1, 1, 1]} : vector<3x16x16xf32> to vector<3x15x16xf32>
    %43 = vector.extract_strided_slice %24 {offsets = [0, 15, 0], sizes = [3, 1, 16], strides = [1, 1, 1]} : vector<3x16x16xf32> to vector<3x1x16xf32>
    %44 = tpu.concatenate %42, %43 in 1 : vector<3x15x16xf32>, vector<3x1x16xf32> -> vector<3x16x16xf32>
    %cst_11 = arith.constant 2.500000e-01 : f32
    %45 = vector.broadcast %cst_11 : f32 to vector<3x16x16xf32>
    %46 = arith.mulf %45, %44 : vector<3x16x16xf32>
    %47 = arith.addf %41, %46 : vector<3x16x16xf32>
    %48 = vector.extract_strided_slice %47 {offsets = [0, 0, 0], sizes = [3, 1, 16], strides = [1, 1, 1]} : vector<3x16x16xf32> to vector<3x1x16xf32>
    %49 = vector.extract_strided_slice %47 {offsets = [0, 0, 0], sizes = [3, 15, 16], strides = [1, 1, 1]} : vector<3x16x16xf32> to vector<3x15x16xf32>
    %50 = tpu.concatenate %48, %49 in 1 : vector<3x1x16xf32>, vector<3x15x16xf32> -> vector<3x16x16xf32>
    %cst_12 = arith.constant 2.000000e+00 : f32
    %51 = vector.broadcast %cst_12 : f32 to vector<3x16x16xf32>
    %52 = arith.mulf %51, %39 : vector<3x16x16xf32>
    %53 = arith.addf %50, %52 : vector<3x16x16xf32>
    %54 = arith.addf %53, %47 : vector<3x16x16xf32>
    %cst_13 = arith.constant 2.000000e+00 : f32
    %55 = vector.broadcast %cst_13 : f32 to vector<3x16x16xf32>
    %56 = arith.mulf %55, %47 : vector<3x16x16xf32>
    %57 = arith.addf %39, %56 : vector<3x16x16xf32>
    %58 = vector.extract_strided_slice %39 {offsets = [0, 1, 0], sizes = [3, 15, 16], strides = [1, 1, 1]} : vector<3x16x16xf32> to vector<3x15x16xf32>
    %59 = vector.extract_strided_slice %39 {offsets = [0, 15, 0], sizes = [3, 1, 16], strides = [1, 1, 1]} : vector<3x16x16xf32> to vector<3x1x16xf32>
    %60 = tpu.concatenate %58, %59 in 1 : vector<3x15x16xf32>, vector<3x1x16xf32> -> vector<3x16x16xf32>
    %61 = arith.addf %57, %60 : vector<3x16x16xf32>
    %cst_14 = arith.constant 6.250000e-02 : f32
    %62 = vector.broadcast %cst_14 : f32 to vector<3x16x16xf32>
    %63 = arith.mulf %54, %62 : vector<3x16x16xf32>
    %c0_15 = arith.constant 0 : index
    %c0_16 = arith.constant 0 : index
    %c0_17 = arith.constant 0 : index
    %c0_18 = arith.constant 0 : index
    %c0_19 = arith.constant 0 : index
    %c0_20 = arith.constant 0 : index
    %64 = vector.load %arg2[%c0_15, %c0_16, %c0_17, %c0_18, %c0_19, %c0_20] : memref<1x2x2x3x16x16xf32, #tpu.memory_space<vmem>>, vector<1x1x1x3x16x16xf32>
    %65 = vector.shape_cast %64 : vector<1x1x1x3x16x16xf32> to vector<3x16x16xf32>
    %66 = vector.shape_cast %63 : vector<3x16x16xf32> to vector<1x1x1x3x16x16xf32>
    tpu.vector_store %arg2[%c0_15, %c0_16, %c0_17, %c0_18, %c0_19, %c0_20], %66 {strides = array<i32>} : memref<1x2x2x3x16x16xf32, #tpu.memory_space<vmem>>, vector<1x1x1x3x16x16xf32>,
    %cst_21 = arith.constant 6.250000e-02 : f32
    %67 = vector.broadcast %cst_21 : f32 to vector<3x16x16xf32>
    %68 = arith.mulf %61, %67 : vector<3x16x16xf32>
    %c0_22 = arith.constant 0 : index
    %c1 = arith.constant 1 : index
    %c0_23 = arith.constant 0 : index
    %c0_24 = arith.constant 0 : index
    %c0_25 = arith.constant 0 : index
    %c0_26 = arith.constant 0 : index
    %69 = vector.load %arg2[%c0_22, %c1, %c0_23, %c0_24, %c0_25, %c0_26] : memref<1x2x2x3x16x16xf32, #tpu.memory_space<vmem>>, vector<1x1x1x3x16x16xf32>
    %70 = vector.shape_cast %69 : vector<1x1x1x3x16x16xf32> to vector<3x16x16xf32>
    %71 = vector.shape_cast %68 : vector<3x16x16xf32> to vector<1x1x1x3x16x16xf32>
    tpu.vector_store %arg2[%c0_22, %c1, %c0_23, %c0_24, %c0_25, %c0_26], %71 {strides = array<i32>} : memref<1x2x2x3x16x16xf32, #tpu.memory_space<vmem>>, vector<1x1x1x3x16x16xf32>,
    %72 = vector.extract_strided_slice %31 {offsets = [0, 0, 0], sizes = [3, 1, 16], strides = [1, 1, 1]} : vector<3x16x16xf32> to vector<3x1x16xf32>
    %73 = vector.extract_strided_slice %31 {offsets = [0, 0, 0], sizes = [3, 15, 16], strides = [1, 1, 1]} : vector<3x16x16xf32> to vector<3x15x16xf32>
    %74 = tpu.concatenate %72, %73 in 1 : vector<3x1x16xf32>, vector<3x15x16xf32> -> vector<3x16x16xf32>
    %cst_27 = arith.constant 2.500000e-01 : f32
    %75 = vector.broadcast %cst_27 : f32 to vector<3x16x16xf32>
    %76 = arith.mulf %75, %74 : vector<3x16x16xf32>
    %cst_28 = arith.constant 7.500000e-01 : f32
    %77 = vector.broadcast %cst_28 : f32 to vector<3x16x16xf32>
    %78 = arith.mulf %77, %31 : vector<3x16x16xf32>
    %79 = arith.addf %76, %78 : vector<3x16x16xf32>
    %cst_29 = arith.constant 7.500000e-01 : f32
    %80 = vector.broadcast %cst_29 : f32 to vector<3x16x16xf32>
    %81 = arith.mulf %80, %31 : vector<3x16x16xf32>
    %82 = vector.extract_strided_slice %31 {offsets = [0, 1, 0], sizes = [3, 15, 16], strides = [1, 1, 1]} : vector<3x16x16xf32> to vector<3x15x16xf32>
    %83 = vector.extract_strided_slice %31 {offsets = [0, 15, 0], sizes = [3, 1, 16], strides = [1, 1, 1]} : vector<3x16x16xf32> to vector<3x1x16xf32>
    %84 = tpu.concatenate %82, %83 in 1 : vector<3x15x16xf32>, vector<3x1x16xf32> -> vector<3x16x16xf32>
    %cst_30 = arith.constant 2.500000e-01 : f32
    %85 = vector.broadcast %cst_30 : f32 to vector<3x16x16xf32>
    %86 = arith.mulf %85, %84 : vector<3x16x16xf32>
    %87 = arith.addf %81, %86 : vector<3x16x16xf32>
    %88 = vector.extract_strided_slice %87 {offsets = [0, 0, 0], sizes = [3, 1, 16], strides = [1, 1, 1]} : vector<3x16x16xf32> to vector<3x1x16xf32>
    %89 = vector.extract_strided_slice %87 {offsets = [0, 0, 0], sizes = [3, 15, 16], strides = [1, 1, 1]} : vector<3x16x16xf32> to vector<3x15x16xf32>
    %90 = tpu.concatenate %88, %89 in 1 : vector<3x1x16xf32>, vector<3x15x16xf32> -> vector<3x16x16xf32>
    %cst_31 = arith.constant 2.000000e+00 : f32
    %91 = vector.broadcast %cst_31 : f32 to vector<3x16x16xf32>
    %92 = arith.mulf %91, %79 : vector<3x16x16xf32>
    %93 = arith.addf %90, %92 : vector<3x16x16xf32>
    %94 = arith.addf %93, %87 : vector<3x16x16xf32>
    %cst_32 = arith.constant 2.000000e+00 : f32
    %95 = vector.broadcast %cst_32 : f32 to vector<3x16x16xf32>
    %96 = arith.mulf %95, %87 : vector<3x16x16xf32>
    %97 = arith.addf %79, %96 : vector<3x16x16xf32>
    %98 = vector.extract_strided_slice %79 {offsets = [0, 1, 0], sizes = [3, 15, 16], strides = [1, 1, 1]} : vector<3x16x16xf32> to vector<3x15x16xf32>
    %99 = vector.extract_strided_slice %79 {offsets = [0, 15, 0], sizes = [3, 1, 16], strides = [1, 1, 1]} : vector<3x16x16xf32> to vector<3x1x16xf32>
    %100 = tpu.concatenate %98, %99 in 1 : vector<3x15x16xf32>, vector<3x1x16xf32> -> vector<3x16x16xf32>
    %101 = arith.addf %97, %100 : vector<3x16x16xf32>
    %cst_33 = arith.constant 6.250000e-02 : f32
    %102 = vector.broadcast %cst_33 : f32 to vector<3x16x16xf32>
    %103 = arith.mulf %94, %102 : vector<3x16x16xf32>
    %c0_34 = arith.constant 0 : index
    %c0_35 = arith.constant 0 : index
    %c1_36 = arith.constant 1 : index
    %c0_37 = arith.constant 0 : index
    %c0_38 = arith.constant 0 : index
    %c0_39 = arith.constant 0 : index
    %104 = vector.load %arg2[%c0_34, %c0_35, %c1_36, %c0_37, %c0_38, %c0_39] : memref<1x2x2x3x16x16xf32, #tpu.memory_space<vmem>>, vector<1x1x1x3x16x16xf32>
    %105 = vector.shape_cast %104 : vector<1x1x1x3x16x16xf32> to vector<3x16x16xf32>
    %106 = vector.shape_cast %103 : vector<3x16x16xf32> to vector<1x1x1x3x16x16xf32>
    tpu.vector_store %arg2[%c0_34, %c0_35, %c1_36, %c0_37, %c0_38, %c0_39], %106 {strides = array<i32>} : memref<1x2x2x3x16x16xf32, #tpu.memory_space<vmem>>, vector<1x1x1x3x16x16xf32>,
    %cst_40 = arith.constant 6.250000e-02 : f32
    %107 = vector.broadcast %cst_40 : f32 to vector<3x16x16xf32>
    %108 = arith.mulf %101, %107 : vector<3x16x16xf32>
    %c0_41 = arith.constant 0 : index
    %c1_42 = arith.constant 1 : index
    %c1_43 = arith.constant 1 : index
    %c0_44 = arith.constant 0 : index
    %c0_45 = arith.constant 0 : index
    %c0_46 = arith.constant 0 : index
    %109 = vector.load %arg2[%c0_41, %c1_42, %c1_43, %c0_44, %c0_45, %c0_46] : memref<1x2x2x3x16x16xf32, #tpu.memory_space<vmem>>, vector<1x1x1x3x16x16xf32>
    %110 = vector.shape_cast %109 : vector<1x1x1x3x16x16xf32> to vector<3x16x16xf32>
    %111 = vector.shape_cast %108 : vector<3x16x16xf32> to vector<1x1x1x3x16x16xf32>
    tpu.vector_store %arg2[%c0_41, %c1_42, %c1_43, %c0_44, %c0_45, %c0_46], %111 {strides = array<i32>} : memref<1x2x2x3x16x16xf32, #tpu.memory_space<vmem>>, vector<1x1x1x3x16x16xf32>,
    return
  }
  func.func @transform_0(%arg0: i32) -> (i32, i32, i32, i32) {
    %c0_i32 = arith.constant 0 : i32
    %c0_i32_0 = arith.constant 0 : i32
    %c0_i32_1 = arith.constant 0 : i32
    %c0_i32_2 = arith.constant 0 : i32
    return %arg0, %c0_i32, %c0_i32_0, %c0_i32_1 : i32, i32, i32, i32
  }
  func.func @transform_1(%arg0: i32) -> (i32, i32, i32, i32, i32, i32) {
    %c0_i32 = arith.constant 0 : i32
    %c0_i32_0 = arith.constant 0 : i32
    %c0_i32_1 = arith.constant 0 : i32
    %c0_i32_2 = arith.constant 0 : i32
    %c0_i32_3 = arith.constant 0 : i32
    %c0_i32_4 = arith.constant 0 : i32
    return %arg0, %c0_i32, %c0_i32_0, %c0_i32_1, %c0_i32_2, %c0_i32_3 : i32, i32, i32, i32, i32, i32
  }
}

module attributes {stable_mosaic.version = 11 : i64} {
  func.func @_rgb_conv_prev_kernel(%arg0: i32, %arg1: i32, %arg2: memref<1x8x256xf32, #tpu.memory_space<vmem>>, %arg3: memref<1x3x8xf32, #tpu.memory_space<vmem>>, %arg4: memref<1x3x256xf32, #tpu.memory_space<vmem>>, %arg5: memref<1x3x256xf32, #tpu.memory_space<vmem>>) attributes {dimension_semantics = [#tpu.dimension_semantics<parallel>, #tpu.dimension_semantics<parallel>], iteration_bounds = array<i64: 2, 1>, scalar_prefetch = 0 : i64, scratch_operands = 0 : i64, tpu.core_type = #tpu.core_type<tc>, window_params = [{transform_indices = @transform_0, window_bounds = array<i64: 1, 8, 256>}, {transform_indices = @transform_1, window_bounds = array<i64: 1, 3, 8>}, {transform_indices = @transform_2, window_bounds = array<i64: 1, 3, 256>}, {transform_indices = @transform_3, window_bounds = array<i64: 1, 3, 256>}]} {
    %c0 = arith.constant 0 : index
    %c0_0 = arith.constant 0 : index
    %c0_1 = arith.constant 0 : index
    %0 = vector.load %arg3[%c0, %c0_0, %c0_1] : memref<1x3x8xf32, #tpu.memory_space<vmem>>, vector<1x3x8xf32>
    %1 = vector.shape_cast %0 : vector<1x3x8xf32> to vector<3x8xf32>
    %c0_2 = arith.constant 0 : index
    %c0_3 = arith.constant 0 : index
    %c0_4 = arith.constant 0 : index
    %2 = vector.load %arg2[%c0_2, %c0_3, %c0_4] : memref<1x8x256xf32, #tpu.memory_space<vmem>>, vector<1x8x256xf32>
    %3 = vector.shape_cast %2 : vector<1x8x256xf32> to vector<8x256xf32>
    %cst = arith.constant dense<0.000000e+00> : vector<3x256xf32>
    %4 = tpu.matmul %1, %3, %cst {dimension_numbers = #tpu.dot_dimension_numbers<[1], [0], [0], [1], [0, 0, 1, 1], [], []>} : vector<3x8xf32>, vector<8x256xf32>, vector<3x256xf32> -> vector<3x256xf32>
    %c0_5 = arith.constant 0 : index
    %c0_6 = arith.constant 0 : index
    %c0_7 = arith.constant 0 : index
    %5 = vector.load %arg4[%c0_5, %c0_6, %c0_7] : memref<1x3x256xf32, #tpu.memory_space<vmem>>, vector<1x3x256xf32>
    %6 = vector.shape_cast %5 : vector<1x3x256xf32> to vector<3x256xf32>
    %7 = arith.addf %4, %6 : vector<3x256xf32>
    %c0_8 = arith.constant 0 : index
    %c0_9 = arith.constant 0 : index
    %c0_10 = arith.constant 0 : index
    %8 = vector.load %arg5[%c0_8, %c0_9, %c0_10] : memref<1x3x256xf32, #tpu.memory_space<vmem>>, vector<1x3x256xf32>
    %9 = vector.shape_cast %8 : vector<1x3x256xf32> to vector<3x256xf32>
    %10 = vector.shape_cast %7 : vector<3x256xf32> to vector<1x3x256xf32>
    tpu.vector_store %arg5[%c0_8, %c0_9, %c0_10], %10 {strides = array<i32>} : memref<1x3x256xf32, #tpu.memory_space<vmem>>, vector<1x3x256xf32>,
    return
  }
  func.func @transform_0(%arg0: i32, %arg1: i32) -> (i32, i32, i32) {
    %c0_i32 = arith.constant 0 : i32
    %c0_i32_0 = arith.constant 0 : i32
    return %arg0, %c0_i32, %arg1 : i32, i32, i32
  }
  func.func @transform_1(%arg0: i32, %arg1: i32) -> (i32, i32, i32) {
    %c0_i32 = arith.constant 0 : i32
    %c0_i32_0 = arith.constant 0 : i32
    %c0_i32_1 = arith.constant 0 : i32
    return %arg0, %c0_i32, %c0_i32_0 : i32, i32, i32
  }
  func.func @transform_2(%arg0: i32, %arg1: i32) -> (i32, i32, i32) {
    %c0_i32 = arith.constant 0 : i32
    %c0_i32_0 = arith.constant 0 : i32
    return %arg0, %c0_i32, %arg1 : i32, i32, i32
  }
  func.func @transform_3(%arg0: i32, %arg1: i32) -> (i32, i32, i32) {
    %c0_i32 = arith.constant 0 : i32
    %c0_i32_0 = arith.constant 0 : i32
    return %arg0, %c0_i32, %arg1 : i32, i32, i32
  }
}

</mosaic_0001>

<bundles_post_ra>
// kernel: generator_block_forward.6
= control target key start
LH: loop header
LB: loop body
LE: loop exit
PB: predicated region body
PF: predicated region fallthrough
CT: control target
= control target key end

     0   :  { %s528_s12 = smov 0   ;;  %s530_s13 = smov 0   ;;  %s567_s0 = inlined_call_operand.vmem [shape: f32[2,8,256], index: 0, kind: input, shape index: {}]   ;;  %s568_s1 = inlined_call_operand.vmem [shape: f32[2,3,8], index: 1, kind: input, shape index: {}]   ;;  %s569_s2 = inlined_call_operand.vmem [shape: f32[2,3,256], index: 2, kind: input, shape index: {}]   ;;  %s570_s3 = inlined_call_operand.vmem [shape: f32[2,3,256], index: 3, kind: output, shape index: {}]  }
   0x1   :  { %s532_s14 = smov 0  }
   0x2 LB: > { %s25_s15 = sadd.s32 1, %s502_s13  ;;  %p445_p0 = scmp.ge.s32.totalorder %s506_s14, 1  ;;  %s506_s14 = sphi %s532_s14, %s13_s14   ;;  %s502_s13 = sphi %s530_s13, %s572_s13   ;;  %s498_s12 = sphi %s528_s12, %s571_s12  }
   0x3   : > { %p27_p1 = scmp.ge.s32.totalorder %s25_s15, 2  ;;  %p184_p2 = scmp.lt.s32.totalorder %s506_s14, 3 }
   0x5   : > { %s574_s15 = smov (%p27_p1, %s25_s15), 0  ;;  %p185_p3 = pnand %p445_p0, %p184_p2 }
   0x6   : > { %p230_p4 = scmp.lt.s32.totalorder (!%p185_p3), %s498_s12, 1 }
   0x7   : > { %188 = sbr.rel (%p185_p3) target bundleno = 150 (0x96), region = 32 }
   0xc   : > { %s576_s12 = smov (!%p230_p4, %s498_s12), 1  ;;  %vm273_vm0 = vcmask 64512   ;;  %vm320_vm1 = vcmask 1043456  }
   0xd   : > { %s457_s16 = sshll.u32 %s576_s12, 4  ;;  %s458_s17 = sshll.u32 %s576_s12, 3 }
   0xe   : > { %s237_s20 = scalar_lea.vmem %s567_s0, %s457_s16  ;;  %s251_s23 = scalar_lea.vmem %s569_s2, %s458_s17 }
   0xf   : > { %v265_v0 = vld [vmem:[%s237_s20 + $0x8] sm:$0xff]  ;;  %v266_v1 = vld [vmem:[%s251_s23] sm:$0x77]  ;;  %s448_s24 = sshll.u32 %s576_s12, 2  ;;  %s261_s30 = scalar_lea.vmem %s570_s3, %s458_s17 }
  0x10   : > { %v264_v2 = vld [vmem:[%s237_s20] sm:$0xff]  ;;  %268 = vst [vmem:[#allocation1] ss:$2 sm:$0xff] %v266_v1  ;;  %312 = vmatpush.msra.mxu1 %v265_v0  ;;  %s242_s27 = scalar_lea.vmem %s568_s1, %s448_s24 }
  0x11   : > { %292 = vmatpush.msra.mxu0 %v264_v2  ;;  %v263_v3 = vld [vmem:[%s242_s27] sm:$0x7] }
  0x12   : > { %454 = vmatmul.msk.f32.vlgmr.msra.gmra.mxu1 %vm273_vm0, %v263_v3  ;;  %453 = vmatmul.msk.f32.vlgmr.msra.gmra.mxu0 %vm273_vm0, %v263_v3 }
  0x17   : > { %v270_v4 = vld.sshfl [vmem:[#allocation1 + $0x8] sm:$0xff pattern:$0x75316420]  ;;  %v269_v5 = vld.sshfl [vmem:[#allocation1] sm:$0xff pattern:$0x75316420] }
  0x8f   : > { %v314_v6 = vpop.f32.mrf.mxu1  ;;  %v294_v7 = vpop.f32.mrf.mxu0 }
  0x90   : > { %v315_v8 = vadd.f32 %v314_v6, %v270_v4  ;;  %v295_v9 = vadd.f32 %v294_v7, %v269_v5 }
  0x92   : > { %v319_v10 = vrot.slane %v315_v8, 4 }
  0x94   : > { %v321_v11 = vsel %vm320_vm1, %v295_v9, %v319_v10 }
  0x95   : > { %323 = vst [vmem:[%s261_s30] sm:$0x77] %v321_v11 }
  0x96 PF: > { %s13_s14 = sadd.s32 1, %s506_s14   ;;  %s571_s12 = smov %s502_s13 }
  0x97   : > { %p10_p5 = scmp.ge.s32.totalorder %s13_s14, 4   ;;  %s572_s13 = smov %s574_s15 }
  0x99   :  { %12 = sbr.rel (!%p10_p5) target bundleno = 2 (0x2), region = 68 }

// kernel: generator_block_forward.4
= control target key start
LH: loop header
LB: loop body
LE: loop exit
PB: predicated region body
PF: predicated region fallthrough
CT: control target
= control target key end

     0   :  { %s1309_s21 = smov 0   ;;  %s1401_s0 = inlined_call_operand.vmem [shape: f32[2,8,362], index: 0, kind: input, shape index: {}]   ;;  %s1402_s1 = inlined_call_operand.vmem [shape: f32[2,9,8,8], index: 1, kind: input, shape index: {}]   ;;  %s1403_s2 = inlined_call_operand.vmem [shape: f32[2,1,324], index: 2, kind: input, shape index: {}]   ;;  %s1404_s3 = inlined_call_operand.vmem [shape: f32[8,1], index: 3, kind: input, shape index: {}]   ;;  %s1405_s4 = inlined_call_operand.vmem [shape: f32[8,1], index: 4, kind: input, shape index: {}]   ;;  %s1406_s5 = inlined_call_operand.vmem [shape: f32[1,324], index: 5, kind: input, shape index: {}]   ;;  %s1407_s6 = inlined_call_operand.vmem [shape: f32[2,8,362], index: 6, kind: output, shape index: {}]  }
   0x1 LB: > { %s1147_s22 = sadd.s32 4294967295, %s1262_s21   ;;  %p1151_p0 = scmp.ge.s32.totalorder %s1262_s21, 1  ;;  %s1262_s21 = sphi %s1309_s21, %s16_s21  }
   0x2   : > { %p231_p1 = scmp.lt.s32.totalorder %s1262_s21, 3 }
   0x4   : > { %p232_p2 = pnand %p1151_p0, %p231_p1 }
   0x5   : > { %p270_p3 = scmp.lt.s32.totalorder (!%p232_p2), %s1147_s22, 1  ;;  %s1264_s27 = smov (!%p232_p2), 127  }
   0x6   : > { %235 = sbr.rel (%p232_p2) target bundleno = 446 (0x1be), region = 44  ;;  %s1265_s28 = smov (!%p232_p2), 126  }
   0x7   : > { %s1266_s29 = smov (!%p232_p2), 110   ;;  %s1267_s30 = smov (!%p232_p2), 109  }
   0x8   : > { %s1268_s7 = smov (!%p232_p2), 108   ;;  %s1269_s8 = smov (!%p232_p2), 92  }
   0x9   : > { %s1270_s9 = smov (!%p232_p2), 91   ;;  %s1271_s10 = smov (!%p232_p2), 90  }
   0xb   : > { %s1409_s22 = smov (!%p270_p3, %s1147_s22), 1  ;;  %vm310_vm0 = vcmask 64512   ;;  %vm304_vm1 = vcmask 1039360   ;;  %vm445_vm2 = vcmask 1031168   ;;  %vm525_vm3 = vcmask 900096   ;;  %v997_v49 = vld [vmem:[%s1404_s3] sm:$0xff] }
   0xc   : > { %s1192_s23 = smul.u32 24, %s1409_s22  ;;  %vm605_vm4 = vcmask 891904   ;;  %vm685_vm5 = vcmask 883712   ;;  %vm765_vm6 = vcmask 752640   ;;  %v1017_v50 = vld [vmem:[%s1405_s4] sm:$0xff]  ;;  %v1272_v51 = vmov 0  }
   0xd   : > { %s1193_s11 = smul.u32 72, %s1409_s22  ;;  %1253 = vset.pattern.permute.xlu1 %v1272_v51  ;;  %1254 = vset.pattern.permute.xlu2 %v1272_v51  ;;  %vm845_vm7 = vcmask 744448   ;;  %vm925_vm8 = vcmask 736256   ;;  %vm1055_vm12 = vcmask 154624   ;;  %vm1062_vm13 = vcmask 711680  }
   0xe   : > { %s274_s26 = scalar_lea.vmem %s1401_s0, %s1192_s23  ;;  %1255 = vset.pattern.permute.xlu0 %v1272_v51  ;;  %s1194_s19 = smul.u32 3, %s1409_s22  ;;  %vm1066_vm14 = vcmask 867328  }
   0xf   : > { %v1325_v0 = vld [vmem:[%s274_s26 + $0x8] sm:$0xff]  ;;  %v292_v1 = vld [vmem:[%s274_s26 + $0x10] sm:$0xff]  ;;  %v290_v2 = vld [vmem:[%s274_s26] sm:$0xff]  ;;  %s1335_s14 = scalar_lea.vmem %s1402_s1, %s1193_s11 }
  0x10   : > { %v1213_v3 = vpack.i.bf16 %v1325_v0, %v292_v1  ;;  %v1218_v4 = vpack.i.bf16 %v1325_v0, %v290_v2  ;;  %392 = vmatpush.msra.mxu3 %v290_v2  ;;  %v1223_v5 = vpack.i.bf16 %v292_v1, %v1325_v0  ;;  %v1248_v6 = vpack.i.bf16 %v290_v2, %v1325_v0  ;;  %v289_v7 = vld [vmem:[%s1335_s14] sm:$0xff]  ;;  %v1155_v17 = vld [vmem:[%s1335_s14 + $0x8] sm:$0xff]  ;;  %v1162_v27 = vld [vmem:[%s1335_s14 + $0x10] sm:$0xff]  ;;  %s283_s25 = scalar_lea.vmem %s1403_s2, %s1194_s19 }
  0x11   : > { %1159 = vmatmul.msk.f32.vlgmr.msra.gmra.mxu3 %vm310_vm0, %v289_v7  ;;  %v1166_v35 = vld [vmem:[%s1335_s14 + $0x18] sm:$0xff]  ;;  %v1170_v45 = vld [vmem:[%s1335_s14 + $0x20] sm:$0xff]  ;;  %v1174_v48 = vld [vmem:[%s1335_s14 + $0x28] sm:$0xff] }
  0x12   : > { %1214 = vrot.lane.b32.xlu0 %v1213_v3, %s1264_s27  ;;  %1219 = vrot.lane.b32.xlu1 %v1218_v4, %s1265_s28  ;;  %v1178_v56 = vld [vmem:[%s1335_s14 + $0x30] sm:$0xff]  ;;  %v1182_v63 = vld [vmem:[%s1335_s14 + $0x38] sm:$0xff] }
  0x13   : > { %1224 = vrot.lane.b32.xlu2 %v1223_v5, %s1266_s29 }
  0x1a   : > { %443 = vrot.lane.b32.xlu1 %v292_v1, %s1265_s28  ;;  %298 = vrot.lane.b32.xlu0 %v290_v2, %s1264_s27  ;;  %s1273_s28 = smov 19  }
  0x1b   : > { %519 = vrot.lane.b32.xlu2 %v290_v2, %s1266_s29 }
  0x22   : > { %1229 = vrot.lane.b32.xlu0 %v1213_v3, %s1267_s30  ;;  %1234 = vrot.lane.b32.xlu1 %v1218_v4, %s1268_s7 }
  0x23   : > { %599 = vrot.lane.b32.xlu2 %v290_v2, %s1267_s30 }
  0x2a   : > { %1239 = vrot.lane.b32.xlu0 %v1218_v4, %s1269_s8  ;;  %763 = vrot.lane.b32.xlu1 %v292_v1, %s1269_s8 }
  0x2b   : > { %683 = vrot.lane.b32.xlu2 %v292_v1, %s1268_s7  ;;  %s288_s7 = scalar_lea.vmem %s1407_s6, %s1192_s23 }
  0x32   : > { %1244 = vrot.lane.b32.xlu0 %v1223_v5, %s1270_s9  ;;  %839 = vrot.lane.b32.xlu1 %v290_v2, %s1270_s9  ;;  %v1186_v2 = vld [vmem:[%s1335_s14 + $0x40] sm:$0xff] }
  0x33   : > { %923 = vrot.lane.b32.xlu2 %v292_v1, %s1271_s10 }
  0x3a   : > { %1249 = vrot.lane.b32.xlu0 %v1248_v6, %s1271_s10  ;;  %1001 = vperm.xlu1 %1253, %v997_v49  }
  0x3b   : > { %1020 = vperm.xlu2 %1254, %v1017_v50  }
  0x6d   : > { %v1225_v8 = vpop.permute.xlu2 %1224 }
  0x6e   : > { %v1227_v9 = vunpack.i.h.bf16 %v1225_v8  ;;  %v1226_v10 = vunpack.i.l.bf16 %v1225_v8 }
  0x70   : > { %v527_v21 = vsel %vm525_vm3, %v1226_v10, %v1227_v9 }
  0x75   : > { %v520_v18 = vpop.permute.xlu2 %519 }
  0x76   : > { %v526_v22 = vsel %vm525_vm3, %v520_v18, %v1226_v10 }
  0x7d   : > { %v600_v28 = vpop.permute.xlu2 %599 }
  0x84   : > { %v1215_v11 = vpop.permute.xlu0 %1214  ;;  %v1220_v12 = vpop.permute.xlu1 %1219 }
  0x85   : > { %v1217_v13 = vunpack.i.h.bf16 %v1215_v11  ;;  %v1222_v14 = vunpack.i.h.bf16 %v1220_v12  ;;  %v1221_v15 = vunpack.i.l.bf16 %v1220_v12  ;;  %v1216_v16 = vunpack.i.l.bf16 %v1215_v11  ;;  %v684_v39 = vpop.permute.xlu2 %683 }
  0x87   : > { %369 = vmatpush.msra.mxu2 %v1216_v16  ;;  %v306_v19 = vsel %vm304_vm1, %v1217_v13, %v1216_v16  ;;  %v446_v20 = vsel %vm445_vm2, %v1221_v15, %v1222_v14 }
  0x88   : > { %349 = vmatpush.msra.mxu1 %v306_v19  ;;  %1158 = vmatmul.msk.f32.vlgmr.msra.gmra.mxu2 %vm310_vm0, %v1155_v17 }
  0x89   : > { %469 = vmatpush.msrb.mxu2 %v446_v20  ;;  %1157 = vmatmul.msk.f32.vlgmr.msra.gmra.mxu1 %vm310_vm0, %v1155_v17 }
  0x8a   : > { %432 = vmatpush.msrb.mxu1 %v292_v1 }
  0x8b   : > { %569 = vmatpush.msra.mxu2 %v527_v21 }
  0x8c   : > { %549 = vmatpush.msra.mxu1 %v526_v22  ;;  %v444_v23 = vpop.permute.xlu1 %443  ;;  %v299_v24 = vpop.permute.xlu0 %298 }
  0x8d   : > { %v305_v25 = vsel %vm304_vm1, %v299_v24, %v1217_v13  ;;  %v447_v26 = vsel %vm445_vm2, %v1222_v14, %v444_v23  ;;  %v924_v59 = vpop.permute.xlu2 %923 }
  0x8e   : > { %329 = vmatpush.msra.mxu0 %v305_v25  ;;  %489 = vmatpush.msrb.mxu3 %v447_v26 }
  0x8f   : > { %1156 = vmatmul.msk.f32.vlgmr.msra.gmra.mxu0 %vm310_vm0, %v1155_v17  ;;  %1164 = vmatmul.msk.f32.vlgmr.msrb.gmra.mxu3 %vm310_vm0, %v1162_v27 }
  0x90   : > { %589 = vmatpush.msra.mxu3 %v1227_v9  ;;  %412 = vmatpush.msrb.mxu0 %v1325_v0 }
  0x91   : > { %1163 = vmatmul.msk.f32.vlgmr.msrb.gmra.mxu2 %vm310_vm0, %v1162_v27  ;;  %1161 = vmatmul.msk.f32.vlgmr.msrb.gmra.mxu1 %vm310_vm0, %v289_v7 }
  0x92   : > { %509 = vmatpush.msra.mxu0 %v444_v23 }
  0x94   : > { %v1230_v29 = vpop.permute.xlu0 %1229  ;;  %v1235_v30 = vpop.permute.xlu1 %1234 }
  0x95   : > { %v1232_v31 = vunpack.i.h.bf16 %v1230_v29  ;;  %v1231_v32 = vunpack.i.l.bf16 %v1230_v29  ;;  %v1237_v33 = vunpack.i.h.bf16 %v1235_v30  ;;  %v1236_v34 = vunpack.i.l.bf16 %v1235_v30  ;;  %v394_v5 = vpop.f32.mrf.mxu3 }
  0x97   : > { %1160 = vmatmul.msk.f32.vlgmr.msrb.gmra.mxu0 %vm310_vm0, %v289_v7  ;;  %669 = vmatpush.msrb.mxu2 %v1231_v32  ;;  %v606_v36 = vsel %vm605_vm4, %v600_v28, %v1232_v31  ;;  %v607_v37 = vsel %vm605_vm4, %v1232_v31, %v1231_v32  ;;  %v686_v38 = vsel %vm685_vm5, %v1236_v34, %v1237_v33 }
  0x98   : > { %629 = vmatpush.msrb.mxu0 %v606_v36  ;;  %649 = vmatpush.msrb.mxu1 %v607_v37  ;;  %v687_v42 = vsel %vm685_vm5, %v1237_v33, %v684_v39 }
  0x99   : > { %1168 = vmatmul.msk.f32.vlgmr.msra.gmra.mxu2 %vm310_vm0, %v1166_v35  ;;  %709 = vmatpush.msrb.mxu3 %v686_v38 }
  0x9a   : > { %1167 = vmatmul.msk.f32.vlgmr.msra.gmra.mxu1 %vm310_vm0, %v1166_v35  ;;  %1169 = vmatmul.msk.f32.vlgmr.msra.gmra.mxu3 %vm310_vm0, %v1166_v35  ;;  %v998_v35 = vld [vmem:[%s283_s25] sm:$0x7] }
  0x9b   : > { %749 = vmatpush.msra.mxu1 %v684_v39  ;;  %v1006_v39 = vperm.slane %v998_v35, 1  ;;  %v1005_v50 = vperm.slane %v998_v35, 0 }
  0x9c   : > { %v1240_v40 = vpop.permute.xlu0 %1239  ;;  %v764_v41 = vpop.permute.xlu1 %763 }
  0x9d   : > { %v1242_v43 = vunpack.i.h.bf16 %v1240_v40  ;;  %v1241_v44 = vunpack.i.l.bf16 %v1240_v40 }
  0x9f   : > { %v767_v46 = vsel %vm765_vm6, %v1242_v43, %v764_v41  ;;  %1165 = vmatmul.msk.f32.vlgmr.msra.gmra.mxu0 %vm310_vm0, %v1162_v27  ;;  %v766_v47 = vsel %vm765_vm6, %v1241_v44, %v1242_v43 }
  0xa0   : > { %729 = vmatpush.msra.mxu0 %v687_v42  ;;  %789 = vmatpush.msra.mxu2 %v766_v47  ;;  %v1007_v47 = vperm.slane %v998_v35, 2 }
  0xa1   : > { %1173 = vmatmul.msk.f32.vlgmr.msrb.gmra.mxu2 %vm310_vm0, %v1170_v45  ;;  %809 = vmatpush.msra.mxu3 %v767_v46 }
  0xa2   : > { %1172 = vmatmul.msk.f32.vlgmr.msrb.gmra.mxu1 %vm310_vm0, %v1170_v45  ;;  %1175 = vmatmul.msk.f32.vlgmr.msrb.gmra.mxu3 %vm310_vm0, %v1174_v48 }
  0xa4   : > { %v1245_v52 = vpop.permute.xlu0 %1244  ;;  %v840_v53 = vpop.permute.xlu1 %839 }
  0xa5   : > { %v1247_v54 = vunpack.i.h.bf16 %v1245_v52  ;;  %v1246_v55 = vunpack.i.l.bf16 %v1245_v52 }
  0xa7   : > { %v846_v57 = vsel %vm845_vm7, %v840_v53, %v1246_v55  ;;  %1171 = vmatmul.msk.f32.vlgmr.msrb.gmra.mxu0 %vm310_vm0, %v1170_v45  ;;  %909 = vmatpush.msrb.mxu3 %v1247_v54  ;;  %v847_v58 = vsel %vm845_vm7, %v1246_v55, %v1247_v54  ;;  %v1021_v54 = vpop.permute.xlu2 %1020 }
  0xa8   : > { %829 = vmatpush.msrb.mxu0 %v764_v41  ;;  %869 = vmatpush.msrb.mxu1 %v846_v57 }
  0xa9   : > { %1179 = vmatmul.msk.f32.vlgmr.msra.gmra.mxu2 %vm310_vm0, %v1178_v56 }
  0xaa   : > { %889 = vmatpush.msrb.mxu2 %v847_v58  ;;  %1177 = vmatmul.msk.f32.vlgmr.msra.gmra.mxu1 %vm310_vm0, %v1174_v48  ;;  %v1035_v58 = vld [vmem:[%s1406_s5] sm:$0x7] }
  0xab   : > { %1180 = vmatmul.msk.f32.vlgmr.msra.gmra.mxu3 %vm310_vm0, %v1178_v56 }
  0xac   : > { %989 = vmatpush.msra.mxu2 %v924_v59  ;;  %v1250_v60 = vpop.permute.xlu0 %1249  ;;  %v1002_v41 = vpop.permute.xlu1 %1001 }
  0xad   : > { %v1252_v61 = vunpack.i.h.bf16 %v1250_v60  ;;  %v1251_v62 = vunpack.i.l.bf16 %v1250_v60  ;;  %v1013_v55 = vmul.f32 %v1007_v47, %v1002_v41  ;;  %v1011_v60 = vmul.f32 %v1005_v50, %v1002_v41 }
  0xaf   : > { %v927_v0 = vsel %vm925_vm8, %v1251_v62, %v924_v59  ;;  %1176 = vmatmul.msk.f32.vlgmr.msra.gmra.mxu0 %vm310_vm0, %v1174_v48  ;;  %v926_v1 = vsel %vm925_vm8, %v1252_v61, %v1251_v62  ;;  %v1012_v48 = vmul.f32 %v1006_v39, %v1002_v41 }
  0xb0   : > { %969 = vmatpush.msra.mxu1 %v927_v0  ;;  %949 = vmatpush.msra.mxu0 %v926_v1 }
  0xb1   : > { %1184 = vmatmul.msk.f32.vlgmr.msrb.gmra.mxu2 %vm310_vm0, %v1182_v63 }
  0xb2   : > { %1183 = vmatmul.msk.f32.vlgmr.msrb.gmra.mxu1 %vm310_vm0, %v1182_v63 }
  0xb3   : > { %1185 = vmatmul.msk.f32.vlgmr.msrb.gmra.mxu3 %vm310_vm0, %v1182_v63 }
  0xb7   : > { %1181 = vmatmul.msk.f32.vlgmr.msrb.gmra.mxu0 %vm310_vm0, %v1178_v56 }
  0xb9   : > { %1189 = vmatmul.msk.f32.vlgmr.msra.gmra.mxu2 %vm310_vm0, %v1186_v2 }
  0xba   : > { %1188 = vmatmul.msk.f32.vlgmr.msra.gmra.mxu1 %vm310_vm0, %v1186_v2 }
  0xbf   : > { %1187 = vmatmul.msk.f32.vlgmr.msra.gmra.mxu0 %vm310_vm0, %v1186_v2  ;;  %v1038_v2 = vperm.slane %v1035_v58, 1 }
 0x106   : > { %v351_v3 = vpop.f32.mrf.mxu1 }
 0x10b   : > { %v371_v4 = vpop.f32.mrf.mxu2 }
 0x10c   : > { %v331_v6 = vpop.f32.mrf.mxu0 }
 0x10d   : > { %v395_v24 = vadd.f32 %v394_v5, %v331_v6 }
 0x10e   : > { %v434_v7 = vpop.f32.mrf.mxu1 }
 0x10f   : > { %v435_v22 = vadd.f32 %v434_v7, %v371_v4 }
 0x112   : > { %v491_v10 = vpop.f32.mrf.mxu3 }
 0x114   : > { %v471_v8 = vpop.f32.mrf.mxu2  ;;  %v414_v9 = vpop.f32.mrf.mxu0 }
 0x115   : > { %v415_v16 = vadd.f32 %v414_v9, %v351_v3  ;;  %v514_v26 = vadd.f32 %v471_v8, %v395_v24 }
 0x117   : > { %v551_v11 = vpop.f32.mrf.mxu1  ;;  %v515_v20 = vadd.f32 %v491_v10, %v415_v16  ;;  %v1039_v10 = vperm.slane %v1035_v58, 2 }
 0x118   : > { %v594_v33 = vadd.f32 %v551_v11, %v514_v26 }
 0x11c   : > { %v571_v12 = vpop.f32.mrf.mxu2  ;;  %v511_v13 = vpop.f32.mrf.mxu0 }
 0x11d   : > { %v591_v14 = vpop.f32.mrf.mxu3  ;;  %v595_v23 = vadd.f32 %v571_v12, %v515_v20  ;;  %v516_v25 = vadd.f32 %v511_v13, %v435_v22  ;;  %v1037_v12 = vperm.slane %v1035_v58, 0 }
 0x11f   : > { %v651_v15 = vpop.f32.mrf.mxu1  ;;  %v596_v31 = vadd.f32 %v591_v14, %v516_v25 }
 0x120   : > { %v675_v28 = vadd.f32 %v651_v15, %v595_v23 }
 0x124   : > { %v671_v17 = vpop.f32.mrf.mxu2  ;;  %v631_v18 = vpop.f32.mrf.mxu0 }
 0x125   : > { %v711_v19 = vpop.f32.mrf.mxu3  ;;  %v676_v36 = vadd.f32 %v671_v17, %v596_v31  ;;  %v674_v37 = vadd.f32 %v631_v18, %v594_v33 }
 0x127   : > { %v751_v21 = vpop.f32.mrf.mxu1  ;;  %v754_v45 = vadd.f32 %v711_v19, %v674_v37 }
 0x128   : > { %v756_v42 = vadd.f32 %v751_v21, %v676_v36 }
 0x12c   : > { %v791_v27 = vpop.f32.mrf.mxu2  ;;  %v731_v29 = vpop.f32.mrf.mxu0 }
 0x12d   : > { %v755_v32 = vadd.f32 %v731_v29, %v675_v28  ;;  %v834_v49 = vadd.f32 %v791_v27, %v754_v45 }
 0x12e   : > { %v811_v30 = vpop.f32.mrf.mxu3 }
 0x12f   : > { %v871_v34 = vpop.f32.mrf.mxu1  ;;  %v835_v38 = vadd.f32 %v811_v30, %v755_v32 }
 0x130   : > { %v914_v59 = vadd.f32 %v871_v34, %v834_v49 }
 0x134   : > { %v891_v40 = vpop.f32.mrf.mxu2  ;;  %v831_v44 = vpop.f32.mrf.mxu0 }
 0x135   : > { %v915_v43 = vadd.f32 %v891_v40, %v835_v38  ;;  %v836_v46 = vadd.f32 %v831_v44, %v756_v42 }
 0x136   : > { %v911_v51 = vpop.f32.mrf.mxu3 }
 0x137   : > { %v971_v52 = vpop.f32.mrf.mxu1  ;;  %v916_v56 = vadd.f32 %v911_v51, %v836_v46 }
 0x138   : > { %v995_v53 = vadd.f32 %v971_v52, %v915_v43 }
 0x13a   : > { %v1015_v57 = vadd.f32 %v1012_v48, %v995_v53 }
 0x13c   : > { %v991_v61 = vpop.f32.mrf.mxu2  ;;  %v1024_v62 = vadd.f32 %v1021_v54, %v1015_v57  ;;  %v951_v0 = vpop.f32.mrf.mxu0 }
 0x13d   : > { %v996_v63 = vadd.f32 %v991_v61, %v916_v56  ;;  %v994_v1 = vadd.f32 %v951_v0, %v914_v59 }
 0x13e   : > { %v1030_v3 = vmul.f32 0.2, %v1024_v62  ;;  %vm1027_vm9 = vcmp.ge.f32.partialorder %v1024_v62, 0.0 }
 0x13f   : > { %v1016_v4 = vadd.f32 %v1013_v55, %v996_v63  ;;  %v1014_v5 = vadd.f32 %v1011_v60, %v994_v1 }
 0x140   : > { %v1033_v7 = vsel %vm1027_vm9, %v1024_v62, %v1030_v3 }
 0x141   : > { %v1025_v6 = vadd.f32 %v1021_v54, %v1016_v4  ;;  %v1023_v8 = vadd.f32 %v1021_v54, %v1014_v5  ;;  %v1044_v9 = vmul.f32 %v1038_v2, %v1033_v7 }
 0x143   : > { %v1031_v11 = vmul.f32 0.2, %v1025_v6  ;;  %vm1028_vm10 = vcmp.ge.f32.partialorder %v1025_v6, 0.0  ;;  %v1029_v13 = vmul.f32 0.2, %v1023_v8  ;;  %1051 = vrot.lane.b32.xlu0 %v1044_v9, %s1273_s28  ;;  %vm1026_vm11 = vcmp.ge.f32.partialorder %v1023_v8, 0.0 }
 0x145   : > { %v1034_v14 = vsel %vm1028_vm10, %v1025_v6, %v1031_v11  ;;  %v1032_v16 = vsel %vm1026_vm11, %v1023_v8, %v1029_v13 }
 0x146   : > { %v1045_v15 = vmul.f32 %v1039_v10, %v1034_v14  ;;  %v1043_v17 = vmul.f32 %v1037_v12, %v1032_v16 }
 0x148   : > { %1053 = vrot.lane.b32.xlu1 %v1045_v15, %s1273_s28  ;;  %1049 = vrot.lane.b32.xlu2 %v1043_v17, %s1273_s28 }
 0x1a2   : > { %v1050_v18 = vpop.permute.xlu2 %1049 }
 0x1a3   : > { %v1061_v19 = vsel %vm1055_vm12, 0.0, %v1050_v18 }
 0x1a4   : > { %1064 = vst [vmem:[%s288_s7] sm:$0xff] %v1061_v19 }
 0x1b5   : > { %v1052_v20 = vpop.permute.xlu0 %1051 }
 0x1b6   : > { %v1056_v21 = vsel %vm1055_vm12, %v1050_v18, %v1052_v20 }
 0x1b7   : > { %1065 = vst [vmem:[%s288_s7 + $0x8] sm:$0xff] %v1056_v21 }
 0x1ba   : > { %v1054_v22 = vpop.permute.xlu1 %1053 }
 0x1bb   : > { %v1057_v23 = vsel %vm1055_vm12, %v1052_v20, %v1054_v22 }
 0x1bc   : > { %v1063_v24 = vsel %vm1062_vm13, %v1057_v23, 0.0 }
 0x1bd   : > { %1067 = vst.msk [vmem:[%s288_s7 + $0x10] sm:$0xff] %vm1066_vm14, %v1063_v24 }
 0x1be PF: > { %s16_s21 = sadd.s32 1, %s1262_s21  }
 0x1bf   : > { %p13_p4 = scmp.ge.s32.totalorder %s16_s21, 4  }
 0x1c1   :  { %15 = sbr.rel (!%p13_p4) target bundleno = 1 (0x1), region = 88 }

// kernel: generator_block_forward.7
= control target key start
LH: loop header
LB: loop body
LE: loop exit
PB: predicated region body
PF: predicated region fallthrough
CT: control target
= control target key end

     0   :  { %s785_s6 = smov 0   ;;  %s1138_s0 = inlined_call_operand.vmem [shape: f32[2,3,16,16], index: 0, kind: input, shape index: {}]   ;;  %s1139_s1 = inlined_call_operand.vmem [shape: f32[2,2,2,3,16,16], index: 1, kind: output, shape index: {}]  }
   0x1 LB: > { %s726_s7 = sadd.s32 4294967295, %s771_s6   ;;  %p730_p0 = scmp.ge.s32.totalorder %s771_s6, 1  ;;  %s771_s6 = sphi %s785_s6, %s11_s6  }
   0x2   : > { %p87_p1 = scmp.lt.s32.totalorder %s771_s6, 3 }
   0x4   : > { %p88_p2 = pnand %p730_p0, %p87_p1 }
   0x5   : > { %p107_p3 = scmp.lt.s32.totalorder (!%p88_p2), %s726_s7, 1  ;;  %s773_s12 = smov (!%p88_p2), 127  }
   0x6   : > { %91 = sbr.rel (%p88_p2) target bundleno = 328 (0x148), region = 24  ;;  %s774_s13 = smov (!%p88_p2), 1  }
   0xb   : > { %s1141_s7 = smov (!%p107_p3, %s726_s7), 1  ;;  %vm190_vm0 = vcmask 121856   ;;  %vm147_vm1 = vcmask 7168   ;;  %vm311_vm2 = vcmask 1040384   ;;  %vm348_vm3 = vcmask 1046528  }
   0xc   : > { %s753_s8 = smul.u32 48, %s1141_s7  ;;  %vm469_vm4 = vcmask 130048  }
   0xd   : > { %s754_s14 = smul.u32 192, %s1141_s7 }
   0xe   : > { %s111_s11 = scalar_lea.vmem %s1138_s0, %s753_s8 }
   0xf   : > { %v119_v0 = vld [vmem:[%s111_s11 + $0x10] sm:$0xff]  ;;  %v117_v1 = vld [vmem:[%s111_s11] sm:$0xff]  ;;  %v805_v3 = vld [vmem:[%s111_s11 + $0x18] sm:$0xff]  ;;  %s1007_s17 = scalar_lea.vmem %s1139_s1, %s754_s14 }
  0x10   : > { %176 = vrot.lane.b32.xlu1 %v119_v0, %s773_s12  ;;  %172 = vrot.lane.b32.xlu0 %v117_v1, %s773_s12  ;;  %v801_v2 = vld [vmem:[%s111_s11 + $0x20] sm:$0xff]  ;;  %v118_v4 = vld [vmem:[%s111_s11 + $0x8] sm:$0xff]  ;;  %v162_v9 = vmul.f32 0.75, %v119_v0  ;;  %v160_v11 = vmul.f32 0.75, %v117_v1  ;;  %v163_v22 = vmul.f32 0.75, %v805_v3 }
  0x11   : > { %180 = vrot.lane.b32.xlu2 %v801_v2, %s773_s12  ;;  %v122_v5 = vld [vmem:[%s111_s11 + $0x28] sm:$0xff]  ;;  %v161_v24 = vmul.f32 0.75, %v118_v4  ;;  %v164_v35 = vmul.f32 0.75, %v801_v2 }
  0x12   : > { %v165_v19 = vmul.f32 0.75, %v122_v5 }
  0x18   : > { %178 = vrot.lane.b32.xlu1 %v805_v3, %s773_s12  ;;  %174 = vrot.lane.b32.xlu0 %v118_v4, %s773_s12 }
  0x19   : > { %182 = vrot.lane.b32.xlu2 %v122_v5, %s773_s12 }
  0x20   : > { %131 = vrot.lane.b32.xlu1 %v118_v4, %s774_s13  ;;  %129 = vrot.lane.b32.xlu0 %v117_v1, %s774_s13 }
  0x21   : > { %133 = vrot.lane.b32.xlu2 %v119_v0, %s774_s13 }
  0x28   : > { %137 = vrot.lane.b32.xlu1 %v801_v2, %s774_s13  ;;  %135 = vrot.lane.b32.xlu0 %v805_v3, %s774_s13 }
  0x29   : > { %139 = vrot.lane.b32.xlu2 %v122_v5, %s774_s13 }
  0x6b   : > { %v181_v6 = vpop.permute.xlu2 %180 }
  0x6c   : > { %v195_v31 = vsel %vm190_vm0, %v181_v6, %v801_v2 }
  0x6d   : > { %v201_v36 = vmul.f32 0.25, %v195_v31 }
  0x6f   : > { %v851_v42 = vadd.f32 %v201_v36, %v164_v35 }
  0x73   : > { %v183_v7 = vpop.permute.xlu2 %182 }
  0x74   : > { %v196_v16 = vsel %vm190_vm0, %v183_v7, %v122_v5 }
  0x75   : > { %v202_v20 = vmul.f32 0.25, %v196_v16 }
  0x77   : > { %v834_v28 = vadd.f32 %v202_v20, %v165_v19 }
  0x7b   : > { %v134_v21 = vpop.permute.xlu2 %133 }
  0x7c   : > { %v150_v34 = vsel %vm147_vm1, %v119_v0, %v134_v21 }
  0x7d   : > { %v156_v38 = vmul.f32 0.25, %v150_v34 }
  0x7f   : > { %v168_v45 = vadd.f32 %v162_v9, %v156_v38  ;;  %v261_v38 = vmul.f32 2.0, %v851_v42 }
  0x81   : > { %v241_v62 = vmul.f32 2.0, %v168_v45 }
  0x82   : > { %v177_v8 = vpop.permute.xlu1 %176  ;;  %v173_v10 = vpop.permute.xlu0 %172 }
  0x83   : > { %v193_v12 = vsel %vm190_vm0, %v177_v8, %v119_v0  ;;  %v191_v13 = vsel %vm190_vm0, %v173_v10, %v117_v1  ;;  %v140_v37 = vpop.permute.xlu2 %139 }
  0x84   : > { %v199_v14 = vmul.f32 0.25, %v193_v12  ;;  %v197_v15 = vmul.f32 0.25, %v191_v13  ;;  %v153_v44 = vsel %vm147_vm1, %v122_v5, %v140_v37 }
  0x85   : > { %v159_v48 = vmul.f32 0.25, %v153_v44 }
  0x86   : > { %v822_v17 = vadd.f32 %v199_v14, %v162_v9  ;;  %v824_v18 = vadd.f32 %v197_v15, %v160_v11  ;;  %v262_v15 = vmul.f32 2.0, %v834_v28 }
  0x87   : > { %v171_v52 = vadd.f32 %v165_v19, %v159_v48 }
  0x88   : > { %219 = vrot.lane.b32.xlu2 %v822_v17, %s774_s13  ;;  %215 = vrot.lane.b32.xlu0 %v824_v18, %s774_s13 }
  0x8a   : > { %v179_v23 = vpop.permute.xlu1 %178  ;;  %v175_v25 = vpop.permute.xlu0 %174 }
  0x8b   : > { %v194_v26 = vsel %vm190_vm0, %v179_v23, %v805_v3  ;;  %v192_v27 = vsel %vm190_vm0, %v175_v25, %v118_v4  ;;  %v268_v23 = vadd.f32 %v262_v15, %v171_v52 }
  0x8c   : > { %v200_v29 = vmul.f32 0.25, %v194_v26  ;;  %v198_v30 = vmul.f32 0.25, %v192_v27 }
  0x8e   : > { %v838_v32 = vadd.f32 %v200_v29, %v163_v22  ;;  %v840_v33 = vadd.f32 %v198_v30, %v161_v24 }
  0x90   : > { %225 = vrot.lane.b32.xlu2 %v834_v28, %s774_s13  ;;  %217 = vrot.lane.b32.xlu1 %v840_v33, %s774_s13  ;;  %v258_v31 = vmul.f32 2.0, %v840_v33  ;;  %v260_v34 = vmul.f32 2.0, %v838_v32 }
  0x91   : > { %221 = vrot.lane.b32.xlu0 %v838_v32, %s774_s13 }
  0x92   : > { %v132_v39 = vpop.permute.xlu1 %131  ;;  %v130_v40 = vpop.permute.xlu0 %129 }
  0x93   : > { %v148_v41 = vsel %vm147_vm1, %v117_v1, %v130_v40  ;;  %v149_v47 = vsel %vm147_vm1, %v118_v4, %v132_v39  ;;  %v259_v4 = vmul.f32 2.0, %v822_v17 }
  0x94   : > { %v154_v43 = vmul.f32 0.25, %v148_v41  ;;  %v155_v49 = vmul.f32 0.25, %v149_v47 }
  0x95   : > { %v265_v8 = vadd.f32 %v259_v4, %v168_v45 }
  0x96   : > { %v854_v46 = vadd.f32 %v160_v11, %v154_v43  ;;  %v864_v55 = vadd.f32 %v161_v24, %v155_v49 }
  0x98   : > { %279 = vrot.lane.b32.xlu2 %v168_v45, %s773_s12  ;;  %223 = vrot.lane.b32.xlu1 %v851_v42, %s774_s13  ;;  %v239_v21 = vmul.f32 2.0, %v854_v46  ;;  %v240_v40 = vmul.f32 2.0, %v864_v55  ;;  %v934_v43 = vadd.f32 %v258_v31, %v864_v55 }
  0x99   : > { %275 = vrot.lane.b32.xlu0 %v854_v46, %s773_s12 }
  0x9a   : > { %v136_v50 = vpop.permute.xlu0 %135  ;;  %v138_v53 = vpop.permute.xlu1 %137 }
  0x9b   : > { %v151_v51 = vsel %vm147_vm1, %v805_v3, %v136_v50  ;;  %v152_v57 = vsel %vm147_vm1, %v801_v2, %v138_v53  ;;  %v244_v2 = vmul.f32 2.0, %v171_v52 }
  0x9c   : > { %v157_v54 = vmul.f32 0.25, %v151_v51  ;;  %v158_v58 = vmul.f32 0.25, %v152_v57 }
  0x9e   : > { %v866_v56 = vadd.f32 %v163_v22, %v157_v54  ;;  %v875_v59 = vadd.f32 %v164_v35, %v158_v58 }
  0xa0   : > { %285 = vrot.lane.b32.xlu2 %v171_v52, %s773_s12  ;;  %277 = vrot.lane.b32.xlu1 %v864_v55, %s773_s12  ;;  %v242_v47 = vmul.f32 2.0, %v866_v56  ;;  %v946_v50 = vadd.f32 %v260_v34, %v866_v56  ;;  %v949_v51 = vadd.f32 %v261_v38, %v875_v59 }
  0xa1   : > { %281 = vrot.lane.b32.xlu0 %v866_v56, %s773_s12 }
  0xa8   : > { %283 = vrot.lane.b32.xlu1 %v875_v59, %s773_s12 }
  0xe2   : > { %v220_v60 = vpop.permute.xlu2 %219 }
  0xe3   : > { %v235_v61 = vsel %vm147_vm1, %v822_v17, %v220_v60 }
  0xe4   : > { %v247_v0 = vadd.f32 %v241_v62, %v235_v61 }
  0xe6   : > { %v885_v5 = vadd.f32 %v247_v0, %v822_v17 }
  0xe8   : > { %v315_v9 = vrot.slane %v885_v5, 7  ;;  %v914_v26 = vmul.f32 0.75, %v885_v5 }
  0xea   : > { %v226_v63 = vpop.permute.xlu2 %225  ;;  %v328_v13 = vsel %vm311_vm2, %v885_v5, %v315_v9 }
  0xeb   : > { %v238_v1 = vsel %vm147_vm1, %v834_v28, %v226_v63  ;;  %v332_v16 = vmul.f32 0.25, %v328_v13 }
  0xec   : > { %v250_v3 = vadd.f32 %v244_v2, %v238_v1 }
  0xed   : > { %v922_v35 = vadd.f32 %v914_v26, %v332_v16 }
  0xee   : > { %v888_v6 = vadd.f32 %v250_v3, %v834_v28  ;;  %v257_v28 = vmul.f32 2.0, %v824_v18 }
  0xef   : > { %v953_v53 = vmul.f32 2.0, %v922_v35  ;;  %v442_v60 = vrot.slane %v922_v35, 1 }
  0xf0   : > { %v356_v12 = vrot.slane %v888_v6, 1  ;;  %v927_v39 = vmul.f32 0.75, %v888_v6  ;;  %v931_v41 = vadd.f32 %v257_v28, %v854_v46  ;;  %v319_v1 = vrot.slane %v888_v6, 7 }
  0xf2   : > { %v280_v7 = vpop.permute.xlu2 %279  ;;  %v366_v17 = vsel %vm348_vm3, %v356_v12, %v888_v6 }
  0xf3   : > { %v295_v10 = vsel %vm190_vm0, %v280_v7, %v168_v45  ;;  %v372_v29 = vmul.f32 0.25, %v366_v17 }
  0xf4   : > { %v892_v11 = vadd.f32 %v295_v10, %v265_v8 }
  0xf5   : > { %v942_v48 = vadd.f32 %v372_v29, %v927_v39 }
  0xf6   : > { %v498_v14 = vrot.slane %v892_v11, 7  ;;  %v937_v44 = vmul.f32 0.75, %v892_v11  ;;  %v534_v2 = vrot.slane %v892_v11, 1 }
  0xf7   : > { %v392_v7 = vrot.slane %v942_v48, 7  ;;  %v972_v15 = vmul.f32 2.0, %v942_v48 }
  0xf8   : > { %v511_v22 = vsel %vm311_vm2, %v892_v11, %v498_v14 }
  0xf9   : > { %v515_v36 = vmul.f32 0.25, %v511_v22 }
  0xfa   : > { %v286_v19 = vpop.permute.xlu2 %285  ;;  %v216_v20 = vpop.permute.xlu0 %215 }
  0xfb   : > { %v298_v24 = vsel %vm190_vm0, %v286_v19, %v171_v52  ;;  %v233_v25 = vsel %vm147_vm1, %v824_v18, %v216_v20  ;;  %v352_v52 = vrot.slane %v885_v5, 1  ;;  %v956_v54 = vadd.f32 %v937_v44, %v515_v36 }
  0xfc   : > { %v245_v27 = vadd.f32 %v239_v21, %v233_v25  ;;  %v917_v30 = vadd.f32 %v298_v24, %v268_v23 }
  0xfd   : > { %v975_v16 = vmul.f32 2.0, %v956_v54  ;;  %v624_v17 = vrot.slane %v956_v54, 1 }
  0xfe   : > { %v251_v37 = vadd.f32 %v245_v27, %v824_v18  ;;  %v243_v18 = vmul.f32 2.0, %v875_v59  ;;  %v538_v49 = vrot.slane %v917_v30, 1  ;;  %v502_v20 = vrot.slane %v917_v30, 7 }
  0xff   : > { %v981_v21 = vmul.f32 0.75, %v917_v30 }
 0x100   : > { %v312_v45 = vrot.slane %v251_v37, 7  ;;  %v336_v62 = vmul.f32 0.75, %v251_v37  ;;  %v548_v8 = vsel %vm348_vm3, %v538_v49, %v917_v30  ;;  %v349_v22 = vrot.slane %v251_v37, 1 }
 0x101   : > { %v984_v24 = vmul.f32 0.25, %v548_v8 }
 0x102   : > { %v327_v57 = vsel %vm311_vm2, %v251_v37, %v312_v45  ;;  %v218_v58 = vpop.permute.xlu1 %217 }
 0x103   : > { %v330_v61 = vmul.f32 0.25, %v327_v57  ;;  %v234_v63 = vsel %vm147_vm1, %v840_v33, %v218_v58  ;;  %v222_v0 = vpop.permute.xlu0 %221 }
 0x104   : > { %v246_v3 = vadd.f32 %v240_v40, %v234_v63  ;;  %v236_v4 = vsel %vm147_vm1, %v838_v32, %v222_v0 }
 0x105   : > { %v342_v10 = vadd.f32 %v336_v62, %v330_v61  ;;  %v248_v13 = vadd.f32 %v242_v47, %v236_v4 }
 0x106   : > { %v252_v19 = vadd.f32 %v246_v3, %v840_v33 }
 0x107   : > { %v254_v23 = vadd.f32 %v248_v13, %v838_v32  ;;  %v403_v25 = vmul.f32 2.0, %v342_v10  ;;  %v439_v29 = vrot.slane %v342_v10, 1 }
 0x108   : > { %v313_v27 = vrot.slane %v252_v19, 7  ;;  %v350_v28 = vrot.slane %v252_v19, 1  ;;  %v337_v31 = vmul.f32 0.75, %v252_v19 }
 0x109   : > { %v316_v34 = vrot.slane %v254_v23, 7  ;;  %v353_v36 = vrot.slane %v254_v23, 1  ;;  %v339_v47 = vmul.f32 0.75, %v254_v23 }
 0x10a   : > { %v314_v38 = vsel %vm311_vm2, %v312_v45, %v313_v27  ;;  %v351_v33 = vsel %vm348_vm3, %v349_v22, %v350_v28  ;;  %v364_v40 = vsel %vm348_vm3, %v350_v28, %v252_v19  ;;  %v224_v57 = vpop.permute.xlu1 %223 }
 0x10b   : > { %v331_v37 = vmul.f32 0.25, %v314_v38  ;;  %v367_v58 = vmul.f32 0.25, %v351_v33  ;;  %v368_v32 = vmul.f32 0.25, %v364_v40  ;;  %v317_v61 = vsel %vm311_vm2, %v315_v9, %v316_v34  ;;  %v276_v63 = vpop.permute.xlu0 %275 }
 0x10c   : > { %v333_v0 = vmul.f32 0.25, %v317_v61  ;;  %v354_v3 = vsel %vm348_vm3, %v352_v52, %v353_v36  ;;  %v365_v45 = vsel %vm348_vm3, %v353_v36, %v254_v23  ;;  %v237_v4 = vsel %vm147_vm1, %v851_v42, %v224_v57 }
 0x10d   : > { %v343_v8 = vadd.f32 %v337_v31, %v331_v37  ;;  %v373_v13 = vadd.f32 %v367_v58, %v336_v62  ;;  %v374_v19 = vadd.f32 %v368_v32, %v337_v31  ;;  %v369_v22 = vmul.f32 0.25, %v354_v3 }
 0x10e   : > { %v345_v27 = vadd.f32 %v339_v47, %v333_v0  ;;  %v370_v28 = vmul.f32 0.25, %v365_v45  ;;  %v249_v5 = vadd.f32 %v243_v18, %v237_v4  ;;  %v293_v9 = vsel %vm190_vm0, %v276_v63, %v854_v46 }
 0x10f   : > { %v385_v34 = vrot.slane %v373_v13, 7  ;;  %v386_v38 = vrot.slane %v374_v19, 7  ;;  %v404_v33 = vmul.f32 2.0, %v343_v8  ;;  %v421_v40 = vmul.f32 2.0, %v373_v13 }
 0x110   : > { %v422_v52 = vmul.f32 2.0, %v374_v19  ;;  %v440_v23 = vrot.slane %v343_v8, 1  ;;  %v375_v36 = vadd.f32 %v369_v22, %v914_v26  ;;  %v376_v57 = vadd.f32 %v370_v28, %v339_v47 }
 0x111   : > { %v387_v62 = vsel %vm311_vm2, %v385_v34, %v386_v38  ;;  %v400_v31 = vsel %vm311_vm2, %v373_v13, %v385_v34  ;;  %v427_v37 = vadd.f32 %v421_v40, %v342_v10  ;;  %v406_v58 = vmul.f32 2.0, %v345_v27 }
 0x112   : > { %v409_v18 = vadd.f32 %v403_v25, %v400_v31  ;;  %v410_v32 = vadd.f32 %v404_v33, %v387_v62  ;;  %v428_v61 = vadd.f32 %v422_v52, %v343_v8  ;;  %v441_v46 = vsel %vm348_vm3, %v439_v29, %v440_v23  ;;  %v278_v28 = vpop.permute.xlu1 %277 }
 0x113   : > { %v454_v63 = vsel %vm348_vm3, %v440_v23, %v343_v8  ;;  %v457_v0 = vadd.f32 %v441_v46, %v427_v37  ;;  %v388_v3 = vrot.slane %v375_v36, 7  ;;  %v389_v45 = vrot.slane %v376_v57, 7 }
 0x114   : > { %v415_v26 = vadd.f32 %v409_v18, %v373_v13  ;;  %v416_v47 = vadd.f32 %v410_v32, %v374_v19  ;;  %v458_v10 = vadd.f32 %v454_v63, %v428_v61  ;;  %v423_v25 = vmul.f32 2.0, %v375_v36 }
 0x115   : > { %v476_v4 = vmul.f32 0.0625, %v457_v0  ;;  %v390_v22 = vsel %vm311_vm2, %v388_v3, %v389_v45  ;;  %v401_v29 = vsel %vm311_vm2, %v375_v36, %v388_v3  ;;  %v424_v8 = vmul.f32 2.0, %v376_v57 }
 0x116   : > { %v463_v34 = vmul.f32 0.0625, %v415_v26  ;;  %v464_v38 = vmul.f32 0.0625, %v416_v47  ;;  %v477_v33 = vmul.f32 0.0625, %v458_v10  ;;  %v411_v40 = vadd.f32 %v953_v53, %v401_v29  ;;  %v282_v26 = vpop.permute.xlu0 %281 }
 0x117   : > { %733 = vst.msk [vmem:[%s1007_s17 + $0x60] sm:$0xff] %vm469_vm4, %v476_v4  ;;  %v412_v13 = vadd.f32 %v406_v58, %v390_v22  ;;  %v429_v19 = vadd.f32 %v423_v25, %v922_v35  ;;  %v430_v52 = vadd.f32 %v424_v8, %v345_v27  ;;  %v443_v23 = vrot.slane %v345_v27, 1 }
 0x118   : > { %470 = vst.msk [vmem:[%s1007_s17] sm:$0xff] %vm469_vm4, %v463_v34  ;;  %v417_v62 = vadd.f32 %v411_v40, %v375_v36  ;;  %v255_v31 = vadd.f32 %v249_v5, %v851_v42  ;;  %v299_v37 = vadd.f32 %v293_v9, %v931_v41  ;;  %v294_v18 = vsel %vm190_vm0, %v278_v28, %v864_v55 }
 0x119   : > { %471 = vst.msk [vmem:[%s1007_s17 + $0x8] sm:$0xff] %vm469_vm4, %v464_v38  ;;  %v418_v53 = vadd.f32 %v412_v13, %v376_v57  ;;  %v444_v58 = vsel %vm348_vm3, %v442_v60, %v443_v23  ;;  %v455_v32 = vsel %vm348_vm3, %v443_v23, %v345_v27  ;;  %v300_v36 = vadd.f32 %v294_v18, %v934_v43 }
 0x11a   : > { %734 = vst.msk [vmem:[%s1007_s17 + $0x68] sm:$0xff] %vm469_vm4, %v477_v33  ;;  %v459_v42 = vadd.f32 %v444_v58, %v429_v19  ;;  %v460_v41 = vadd.f32 %v455_v32, %v430_v52  ;;  %v465_v5 = vmul.f32 0.0625, %v417_v62  ;;  %v318_v9 = vrot.slane %v255_v31, 7 }
 0x11b   : > { %v466_v55 = vmul.f32 0.0625, %v418_v53  ;;  %v340_v61 = vmul.f32 0.75, %v255_v31  ;;  %v355_v46 = vrot.slane %v255_v31, 1  ;;  %v495_v57 = vrot.slane %v299_v37, 7 }
 0x11c   : > { %472 = vst.msk [vmem:[%s1007_s17 + $0x10] sm:$0xff] %vm469_vm4, %v465_v5  ;;  %v478_v35 = vmul.f32 0.0625, %v459_v42  ;;  %v479_v60 = vmul.f32 0.0625, %v460_v41  ;;  %v320_v43 = vsel %vm311_vm2, %v318_v9, %v319_v1  ;;  %v329_v27 = vsel %vm311_vm2, %v255_v31, %v318_v9 }
 0x11d   : > { %473 = vst.msk [vmem:[%s1007_s17 + $0x18] sm:$0xff] %vm469_vm4, %v466_v55  ;;  %v334_v63 = vmul.f32 0.25, %v329_v27  ;;  %v335_v0 = vmul.f32 0.25, %v320_v43  ;;  %v357_v3 = vsel %vm348_vm3, %v355_v46, %v356_v12  ;;  %v510_v45 = vsel %vm311_vm2, %v299_v37, %v495_v57 }
 0x11e   : > { %735 = vst.msk [vmem:[%s1007_s17 + $0x70] sm:$0xff] %vm469_vm4, %v478_v35  ;;  %v371_v47 = vmul.f32 0.25, %v357_v3  ;;  %v513_v10 = vmul.f32 0.25, %v510_v45  ;;  %v519_v25 = vmul.f32 0.75, %v299_v37  ;;  %v531_v4 = vrot.slane %v299_v37, 1 }
 0x11f   : > { %736 = vst.msk [vmem:[%s1007_s17 + $0x78] sm:$0xff] %vm469_vm4, %v479_v60  ;;  %v346_v1 = vadd.f32 %v340_v61, %v334_v63  ;;  %v347_v22 = vadd.f32 %v927_v39, %v335_v0  ;;  %v496_v29 = vrot.slane %v300_v36, 7  ;;  %v520_v8 = vmul.f32 0.75, %v300_v36 }
 0x120   : > { %v377_v28 = vadd.f32 %v371_v47, %v340_v61  ;;  %v525_v6 = vadd.f32 %v519_v25, %v513_v10  ;;  %v532_v34 = vrot.slane %v300_v36, 1  ;;  %v296_v12 = vsel %vm190_vm0, %v282_v26, %v866_v56 }
 0x121   : > { %v407_v38 = vmul.f32 2.0, %v346_v1  ;;  %v408_v33 = vmul.f32 2.0, %v347_v22  ;;  %v432_v40 = vadd.f32 %v972_v15, %v347_v22  ;;  %v445_v13 = vrot.slane %v346_v1, 1 }
 0x122   : > { %v391_v19 = vrot.slane %v377_v28, 7  ;;  %v425_v52 = vmul.f32 2.0, %v377_v28  ;;  %v446_v23 = vrot.slane %v347_v22, 1  ;;  %v585_v62 = vmul.f32 2.0, %v525_v6 }
 0x123   : > { %v621_v31 = vrot.slane %v525_v6, 1  ;;  %v497_v39 = vsel %vm311_vm2, %v495_v57, %v496_v29  ;;  %v533_v37 = vsel %vm348_vm3, %v531_v4, %v532_v34  ;;  %v546_v18 = vsel %vm348_vm3, %v532_v34, %v300_v36  ;;  %v284_v29 = vpop.permute.xlu1 %283 }
 0x124   : > { %v393_v56 = vsel %vm311_vm2, %v391_v19, %v392_v7  ;;  %v402_v53 = vsel %vm311_vm2, %v377_v28, %v391_v19  ;;  %v431_v58 = vadd.f32 %v425_v52, %v346_v1  ;;  %v447_v15 = vsel %vm348_vm3, %v445_v13, %v446_v23 }
 0x125   : > { %v413_v32 = vadd.f32 %v407_v38, %v402_v53  ;;  %v414_v42 = vadd.f32 %v408_v33, %v393_v56  ;;  %v456_v41 = vsel %vm348_vm3, %v446_v23, %v347_v22  ;;  %v514_v5 = vmul.f32 0.25, %v497_v39 }
 0x126   : > { %v461_v9 = vadd.f32 %v447_v15, %v431_v58  ;;  %v462_v55 = vadd.f32 %v456_v41, %v432_v40  ;;  %v549_v61 = vmul.f32 0.25, %v533_v37  ;;  %v550_v46 = vmul.f32 0.25, %v546_v18 }
 0x127   : > { %v419_v36 = vadd.f32 %v413_v32, %v377_v28  ;;  %v420_v57 = vadd.f32 %v414_v42, %v942_v48  ;;  %v526_v7 = vadd.f32 %v520_v8, %v514_v5  ;;  %v302_v35 = vadd.f32 %v296_v12, %v946_v50 }
 0x128   : > { %v480_v60 = vmul.f32 0.0625, %v461_v9  ;;  %v481_v43 = vmul.f32 0.0625, %v462_v55  ;;  %v555_v27 = vadd.f32 %v549_v61, %v519_v25  ;;  %v556_v63 = vadd.f32 %v550_v46, %v520_v8 }
 0x129   : > { %v467_v0 = vmul.f32 0.0625, %v419_v36  ;;  %v468_v3 = vmul.f32 0.0625, %v420_v57  ;;  %v586_v45 = vmul.f32 2.0, %v526_v7  ;;  %v622_v26 = vrot.slane %v526_v7, 1 }
 0x12a   : > { %737 = vst.msk [vmem:[%s1007_s17 + $0x80] sm:$0xff] %vm469_vm4, %v480_v60  ;;  %v567_v47 = vrot.slane %v555_v27, 7  ;;  %v568_v10 = vrot.slane %v556_v63, 7  ;;  %v603_v4 = vmul.f32 2.0, %v555_v27  ;;  %v604_v48 = vmul.f32 2.0, %v556_v63 }
 0x12b   : > { %474 = vst.msk [vmem:[%s1007_s17 + $0x20] sm:$0xff] %vm469_vm4, %v467_v0  ;;  %v623_v50 = vsel %vm348_vm3, %v621_v31, %v622_v26  ;;  %v636_v1 = vsel %vm348_vm3, %v622_v26, %v526_v7  ;;  %v499_v25 = vrot.slane %v302_v35, 7  ;;  %v522_v22 = vmul.f32 0.75, %v302_v35 }
 0x12c   : > { %475 = vst.msk [vmem:[%s1007_s17 + $0x28] sm:$0xff] %vm469_vm4, %v468_v3  ;;  %v569_v8 = vsel %vm311_vm2, %v567_v47, %v568_v10  ;;  %v582_v28 = vsel %vm311_vm2, %v555_v27, %v567_v47  ;;  %v609_v34 = vadd.f32 %v603_v4, %v525_v6  ;;  %v610_v12 = vadd.f32 %v604_v48, %v526_v7 }
 0x12d   : > { %738 = vst.msk [vmem:[%s1007_s17 + $0x88] sm:$0xff] %vm469_vm4, %v481_v43  ;;  %v591_v38 = vadd.f32 %v585_v62, %v582_v28  ;;  %v592_v33 = vadd.f32 %v586_v45, %v569_v8  ;;  %v500_v40 = vsel %vm311_vm2, %v498_v14, %v499_v25  ;;  %v535_v13 = vrot.slane %v302_v35, 1 }
 0x12e   : > { %v639_v19 = vadd.f32 %v623_v50, %v609_v34  ;;  %v640_v52 = vadd.f32 %v636_v1, %v610_v12  ;;  %v516_v23 = vmul.f32 0.25, %v500_v40  ;;  %v297_v31 = vsel %vm190_vm0, %v284_v29, %v875_v59 }
 0x12f   : > { %v597_v39 = vadd.f32 %v591_v38, %v555_v27  ;;  %v598_v37 = vadd.f32 %v592_v33, %v556_v63  ;;  %v536_v6 = vsel %vm348_vm3, %v534_v2, %v535_v13  ;;  %v547_v62 = vsel %vm348_vm3, %v535_v13, %v302_v35 }
 0x130   : > { %v658_v18 = vmul.f32 0.0625, %v639_v19  ;;  %v659_v56 = vmul.f32 0.0625, %v640_v52  ;;  %v528_v14 = vadd.f32 %v522_v22, %v516_v23  ;;  %v551_v53 = vmul.f32 0.25, %v536_v6 }
 0x131   : > { %v645_v58 = vmul.f32 0.0625, %v597_v39  ;;  %v646_v15 = vmul.f32 0.0625, %v598_v37  ;;  %v552_v32 = vmul.f32 0.25, %v547_v62  ;;  %v303_v42 = vadd.f32 %v297_v31, %v949_v51 }
 0x132   : > { %v1085_v59 = vadd.f32 %v984_v24, %v981_v21  ;;  %745 = vst.msk [vmem:[%s1007_s17 + $0x90] sm:$0xff] %vm469_vm4, %v658_v18  ;;  %v557_v11 = vadd.f32 %v551_v53, %v937_v44  ;;  %v588_v2 = vmul.f32 2.0, %v528_v14  ;;  %v625_v41 = vrot.slane %v528_v14, 1 }
 0x133   : > { %739 = vst.msk [vmem:[%s1007_s17 + $0x30] sm:$0xff] %vm469_vm4, %v645_v58  ;;  %v558_v5 = vadd.f32 %v552_v32, %v522_v22  ;;  %v501_v9 = vrot.slane %v303_v42, 7  ;;  %v523_v55 = vmul.f32 0.75, %v303_v42  ;;  %v537_v61 = vrot.slane %v303_v42, 1 }
 0x134   : > { %740 = vst.msk [vmem:[%s1007_s17 + $0x38] sm:$0xff] %vm469_vm4, %v646_v15  ;;  %v570_v51 = vrot.slane %v557_v11, 7  ;;  %v605_v46 = vmul.f32 2.0, %v557_v11  ;;  %v626_v24 = vsel %vm348_vm3, %v624_v17, %v625_v41  ;;  %v637_v36 = vsel %vm348_vm3, %v625_v41, %v528_v14 }
 0x135   : > { %746 = vst.msk [vmem:[%s1007_s17 + $0x98] sm:$0xff] %vm469_vm4, %v659_v56  ;;  %v571_v44 = vrot.slane %v558_v5, 7  ;;  %v606_v57 = vmul.f32 2.0, %v558_v5  ;;  %v503_v7 = vsel %vm311_vm2, %v501_v9, %v502_v20  ;;  %v512_v35 = vsel %vm311_vm2, %v303_v42, %v501_v9 }
 0x136   : > { %v583_v60 = vsel %vm311_vm2, %v557_v11, %v570_v51  ;;  %v611_v43 = vadd.f32 %v605_v46, %v956_v54  ;;  %v517_v27 = vmul.f32 0.25, %v512_v35  ;;  %v518_v63 = vmul.f32 0.25, %v503_v7 }
 0x137   : > { %v572_v17 = vsel %vm311_vm2, %v570_v51, %v571_v44  ;;  %v593_v0 = vadd.f32 %v975_v16, %v583_v60  ;;  %v612_v3 = vadd.f32 %v606_v57, %v528_v14  ;;  %v539_v45 = vsel %vm348_vm3, %v537_v61, %v538_v49 }
 0x138   : > { %v594_v26 = vadd.f32 %v588_v2, %v572_v17  ;;  %v641_v20 = vadd.f32 %v626_v24, %v611_v43  ;;  %v529_v47 = vadd.f32 %v523_v55, %v517_v27  ;;  %v530_v10 = vadd.f32 %v981_v21, %v518_v63 }
 0x139   : > { %v608_v4 = vmul.f32 2.0, %v1085_v59  ;;  %v599_v54 = vadd.f32 %v593_v0, %v557_v11  ;;  %v642_v48 = vadd.f32 %v637_v36, %v612_v3  ;;  %v553_v50 = vmul.f32 0.25, %v539_v45 }
 0x13a   : > { %v600_v1 = vadd.f32 %v594_v26, %v558_v5  ;;  %v660_v16 = vmul.f32 0.0625, %v641_v20  ;;  %v589_v25 = vmul.f32 2.0, %v529_v47  ;;  %v590_v28 = vmul.f32 2.0, %v530_v10 }
 0x13b   : > { %v647_v22 = vmul.f32 0.0625, %v599_v54  ;;  %v661_v30 = vmul.f32 0.0625, %v642_v48  ;;  %v559_v49 = vadd.f32 %v553_v50, %v523_v55  ;;  %v614_v29 = vadd.f32 %v608_v4, %v530_v10 }
 0x13c   : > { %v648_v8 = vmul.f32 0.0625, %v600_v1  ;;  %747 = vst.msk [vmem:[%s1007_s17 + $0xa0] sm:$0xff] %vm469_vm4, %v660_v16  ;;  %v627_v21 = vrot.slane %v529_v47, 1  ;;  %v628_v34 = vrot.slane %v530_v10, 1  ;;  %v574_v12 = vrot.slane %v1085_v59, 7 }
 0x13d   : > { %741 = vst.msk [vmem:[%s1007_s17 + $0x40] sm:$0xff] %vm469_vm4, %v647_v22  ;;  %v573_v38 = vrot.slane %v559_v49, 7  ;;  %v607_v33 = vmul.f32 2.0, %v559_v49 }
 0x13e   : > { %742 = vst.msk [vmem:[%s1007_s17 + $0x48] sm:$0xff] %vm469_vm4, %v648_v8  ;;  %v629_v40 = vsel %vm348_vm3, %v627_v21, %v628_v34  ;;  %v638_v13 = vsel %vm348_vm3, %v628_v34, %v530_v10 }
 0x13f   : > { %748 = vst.msk [vmem:[%s1007_s17 + $0xa8] sm:$0xff] %vm469_vm4, %v661_v30  ;;  %v575_v19 = vsel %vm311_vm2, %v573_v38, %v574_v12  ;;  %v584_v52 = vsel %vm311_vm2, %v559_v49, %v573_v38  ;;  %v613_v23 = vadd.f32 %v607_v33, %v529_v47  ;;  %v644_v31 = vadd.f32 %v638_v13, %v614_v29 }
 0x140   : > { %v595_v39 = vadd.f32 %v589_v25, %v584_v52  ;;  %v596_v37 = vadd.f32 %v590_v28, %v575_v19 }
 0x141   : > { %v643_v6 = vadd.f32 %v629_v40, %v613_v23  ;;  %v663_v62 = vmul.f32 0.0625, %v644_v31 }
 0x142   : > { %v601_v18 = vadd.f32 %v595_v39, %v559_v49  ;;  %v602_v56 = vadd.f32 %v596_v37, %v1085_v59 }
 0x143   : > { %v662_v14 = vmul.f32 0.0625, %v643_v6  ;;  %750 = vst.msk [vmem:[%s1007_s17 + $0xb8] sm:$0xff] %vm469_vm4, %v663_v62 }
 0x144   : > { %v649_v53 = vmul.f32 0.0625, %v601_v18  ;;  %v650_v58 = vmul.f32 0.0625, %v602_v56 }
 0x145   : > { %749 = vst.msk [vmem:[%s1007_s17 + $0xb0] sm:$0xff] %vm469_vm4, %v662_v14 }
 0x146   : > { %743 = vst.msk [vmem:[%s1007_s17 + $0x50] sm:$0xff] %vm469_vm4, %v649_v53 }
 0x147   : > { %744 = vst.msk [vmem:[%s1007_s17 + $0x58] sm:$0xff] %vm469_vm4, %v650_v58 }
 0x148 PF: > { %s11_s6 = sadd.s32 1, %s771_s6  }
 0x149   : > { %p8_p4 = scmp.ge.s32.totalorder %s11_s6, 4  }
 0x14b   :  { %10 = sbr.rel (!%p8_p4) target bundleno = 1 (0x1), region = 57 }

</bundles_post_ra>
